<compile_context>
chip_gen: v7x
topology: tpu7x:2x2x1
jax: 0.10.0
libtpu: 0.0.40
codegen_flags: <defaults>
</compile_context>

<pallas_src>
import jax
import jax.numpy as jnp
from jax.experimental import pallas as pl
from jax.experimental.pallas import tpu as pltpu

# feature_size = dataconverter2.data_max_tokens -> synthetic, lane-aligned value
FEATURE_SIZE = 128
BATCH = 256
TILE_M = 256          # one grid step at BATCH=256; use 128 to give v7x 2 steps


def _classificator_kernel(x_ref,
                          w1_ref, b1_ref,
                          w2_ref, b2_ref,
                          w3_ref, b3_ref,
                          w4_ref, b4_ref,
                          o_ref):
    """Fused MLP forward for one (TILE_M, F) tile of the batch."""
    # In-kernel bf16 cast of the activations (VPU, hidden under the MXU).
    x = x_ref[...].astype(jnp.bfloat16)                        # (TILE_M, F)

    # Layer 1: bf16 MXU matmul, f32 accumulate, bias + ReLU in f32.
    h = jnp.dot(x, w1_ref[...], preferred_element_type=jnp.float32) + b1_ref[...]
    h = jnp.maximum(h, 0.0).astype(jnp.bfloat16)               # ReLU 1

    # Layer 2
    h = jnp.dot(h, w2_ref[...], preferred_element_type=jnp.float32) + b2_ref[...]
    h = jnp.maximum(h, 0.0).astype(jnp.bfloat16)               # ReLU 2

    # Layer 3 (keep the f32 result for the VPU/XLU output reduction)
    h = jnp.dot(h, w3_ref[...], preferred_element_type=jnp.float32) + b3_ref[...]
    h = jnp.maximum(h, 0.0)                                    # ReLU 3

    # Output layer: N=1 matmul -> elementwise multiply + cross-lane sum instead
    # of pushing a nearly-empty tile through the MXU.
    z = jnp.sum(h * w4_ref[...], axis=-1, keepdims=True) + b4_ref[...]  # (TILE_M, 1)

    # Lane-dense store: (TILE_M, 1) -> (1, TILE_M) via XLU transpose, then a
    # full-width unmasked vst into the (1, padded_B) output slab.
    o_ref[...] = jax.nn.sigmoid(z).T                           # Sigmoid


def prepare_kernel_params(params):
    """One-time conversion of f32 (in, out) params to kernel-ready operands."""
    f = params["w1"].shape[0]
    return {
        "w1": params["w1"].astype(jnp.bfloat16),
        "b1": params["b1"].astype(jnp.float32),
        "w2": params["w2"].astype(jnp.bfloat16),
        "b2": params["b2"].astype(jnp.float32),
        "w3": params["w3"].astype(jnp.bfloat16),
        "b3": params["b3"].astype(jnp.float32),
        "w4_row": params["w4"].reshape(1, f).astype(jnp.float32),  # (F,1) -> (1,F)
        "b4": params["b4"].reshape(1, 1).astype(jnp.float32),
    }


def classificator_forward(x, kparams, *, tile_m=TILE_M):
    """x: (B, F) float32.  kparams: output of prepare_kernel_params."""
    B, F = x.shape
    assert tile_m % 128 == 0, "tile_m must be lane-aligned for the dense output"

    # Pad batch to a multiple of the tile (no-op for the example shapes).
    padded_b = pl.cdiv(B, tile_m) * tile_m
    if padded_b != B:
        x = jnp.pad(x, ((0, padded_b - B), (0, 0)))
    num_tiles = padded_b // tile_m

    w1, w2, w3 = kparams["w1"], kparams["w2"], kparams["w3"]
    b1, b2, b3 = kparams["b1"], kparams["b2"], kparams["b3"]
    w4_row, b4 = kparams["w4_row"], kparams["b4"]

    # Weight/bias blocks: constant index_map -> stay resident in VMEM.
    const = lambda shape: pl.BlockSpec(shape, lambda i: (0, 0))

    flops = 2 * padded_b * F * F * 3 + 2 * padded_b * F
    bytes_accessed = (x.size * 4
                      + (w1.size + w2.size + w3.size) * 2
                      + (b1.size + b2.size + b3.size + w4_row.size + b4.size) * 4
                      + padded_b * 4)
    cost = pl.CostEstimate(flops=flops,
                           transcendentals=padded_b,
                           bytes_accessed=bytes_accessed)

    out = pl.pallas_call(
        _classificator_kernel,
        # Lane-dense output slab: one row, padded_b lanes.
        out_shape=jax.ShapeDtypeStruct((1, padded_b), jnp.float32),
        grid=(num_tiles,),
        in_specs=[
            pl.BlockSpec((tile_m, F), lambda i: (i, 0)),       # x tile (pipelined)
            const((F, F)), const((1, F)),                      # w1, b1
            const((F, F)), const((1, F)),                      # w2, b2
            const((F, F)), const((1, F)),                      # w3, b3
            const((1, F)),                                     # w4 as a lane row
            const((1, 1)),                                     # b4 scalar block
        ],
        out_specs=pl.BlockSpec((1, tile_m), lambda i: (0, i)),
        compiler_params=pltpu.CompilerParams(
            dimension_semantics=("parallel",)),
        cost_estimate=cost,
    )(x, w1, b1, w2, b2, w3, b3, w4_row, b4)

    # (1, padded_b) -> (padded_b, 1) -> drop batch padding.
    return out.reshape(padded_b, 1)[:B]


def init_params(key, feature_size):
    """Mimics PyTorch's default Linear init (uniform +/- 1/sqrt(fan_in)).
    Weights stored as (in, out)."""
    keys = jax.random.split(key, 8)
    params = {}
    layer_dims = [
        ("w1", "b1", feature_size, feature_size),
        ("w2", "b2", feature_size, feature_size),
        ("w3", "b3", feature_size, feature_size),
        ("w4", "b4", feature_size, 1),
    ]
    for i, (wn, bn, fan_in, fan_out) in enumerate(layer_dims):
        bound = 1.0 / jnp.sqrt(float(fan_in))
        params[wn] = jax.random.uniform(
            keys[2 * i], (fan_in, fan_out), jnp.float32, -bound, bound)
        params[bn] = jax.random.uniform(
            keys[2 * i + 1], (1, fan_out), jnp.float32, -bound, bound)
    return params


def _reference_forward(x, p):
    """Pure-JAX fp32 reference of the same math."""
    h = jax.nn.relu(x @ p["w1"] + p["b1"])
    h = jax.nn.relu(h @ p["w2"] + p["b2"])
    h = jax.nn.relu(h @ p["w3"] + p["b3"])
    return jax.nn.sigmoid(h @ p["w4"] + p["b4"])


if __name__ == "__main__":
    key = jax.random.PRNGKey(0)
    kx, kp = jax.random.split(key)

    x = jax.random.normal(kx, (BATCH, FEATURE_SIZE), jnp.float32)
    params = init_params(kp, FEATURE_SIZE)
    kparams = prepare_kernel_params(params)       # one-time bf16 weight cast

    out = classificator_forward(x, kparams)
    out = jax.block_until_ready(out)

    ref = _reference_forward(x, params)
    assert out.shape == (BATCH, 1)
    # bf16 matmul operands (f32 accumulation) -> relaxed tolerance vs fp32 ref.
    assert jnp.allclose(out, ref, atol=2e-2, rtol=2e-2), (
        float(jnp.max(jnp.abs(out - ref))))

    print("KERNEL_OK")
</pallas_src>

<mosaic_0001>
module attributes {stable_mosaic.version = 11 : i64} {
  func.func @_classificator_kernel(%arg0: i32, %arg1: memref<256x128xf32, #tpu.memory_space<vmem>>, %arg2: memref<128x128xbf16, #tpu.memory_space<vmem>>, %arg3: memref<1x128xf32, #tpu.memory_space<vmem>>, %arg4: memref<128x128xbf16, #tpu.memory_space<vmem>>, %arg5: memref<1x128xf32, #tpu.memory_space<vmem>>, %arg6: memref<128x128xbf16, #tpu.memory_space<vmem>>, %arg7: memref<1x128xf32, #tpu.memory_space<vmem>>, %arg8: memref<1x128xf32, #tpu.memory_space<vmem>>, %arg9: memref<1x1xf32, #tpu.memory_space<vmem>>, %arg10: memref<1x256xf32, #tpu.memory_space<vmem>>) attributes {dimension_semantics = [#tpu.dimension_semantics<parallel>], iteration_bounds = array<i64: 1>, scalar_prefetch = 0 : i64, scratch_operands = 0 : i64, tpu.core_type = #tpu.core_type<tc>, window_params = [{transform_indices = @transform_0, window_bounds = array<i64: 256, 128>}, {pipeline_mode = #tpu.pipeline_mode<synchronous>, transform_indices = @transform_1, window_bounds = array<i64: 128, 128>}, {pipeline_mode = #tpu.pipeline_mode<synchronous>, transform_indices = @transform_2, window_bounds = array<i64: 1, 128>}, {pipeline_mode = #tpu.pipeline_mode<synchronous>, transform_indices = @transform_3, window_bounds = array<i64: 128, 128>}, {pipeline_mode = #tpu.pipeline_mode<synchronous>, transform_indices = @transform_4, window_bounds = array<i64: 1, 128>}, {pipeline_mode = #tpu.pipeline_mode<synchronous>, transform_indices = @transform_5, window_bounds = array<i64: 128, 128>}, {pipeline_mode = #tpu.pipeline_mode<synchronous>, transform_indices = @transform_6, window_bounds = array<i64: 1, 128>}, {pipeline_mode = #tpu.pipeline_mode<synchronous>, transform_indices = @transform_7, window_bounds = array<i64: 1, 128>}, {pipeline_mode = #tpu.pipeline_mode<synchronous>, transform_indices = @transform_8, window_bounds = array<i64: 1, 1>}, {transform_indices = @transform_9, window_bounds = array<i64: 1, 256>}]} {
    %c0 = arith.constant 0 : index
    %c0_0 = arith.constant 0 : index
    %0 = vector.load %arg1[%c0, %c0_0] : memref<256x128xf32, #tpu.memory_space<vmem>>, vector<256x128xf32>
    %1 = arith.truncf %0 : vector<256x128xf32> to vector<256x128xbf16>
    %c0_1 = arith.constant 0 : index
    %c0_2 = arith.constant 0 : index
    %2 = vector.load %arg2[%c0_1, %c0_2] : memref<128x128xbf16, #tpu.memory_space<vmem>>, vector<128x128xbf16>
    %cst = arith.constant dense<0.000000e+00> : vector<256x128xf32>
    %3 = tpu.matmul %1, %2, %cst {dimension_numbers = #tpu.dot_dimension_numbers<[1], [0], [0], [1], [0, 0, 1, 1], [], []>} : vector<256x128xbf16>, vector<128x128xbf16>, vector<256x128xf32> -> vector<256x128xf32>
    %c0_3 = arith.constant 0 : index
    %c0_4 = arith.constant 0 : index
    %4 = vector.load %arg3[%c0_3, %c0_4] : memref<1x128xf32, #tpu.memory_space<vmem>>, vector<1x128xf32>
    %5 = vector.broadcast %4 : vector<1x128xf32> to vector<256x128xf32>
    %6 = arith.addf %3, %5 : vector<256x128xf32>
    %cst_5 = arith.constant 0.000000e+00 : f32
    %7 = vector.broadcast %cst_5 : f32 to vector<256x128xf32>
    %8 = arith.maximumf %6, %7 : vector<256x128xf32>
    %9 = arith.truncf %8 : vector<256x128xf32> to vector<256x128xbf16>
    %c0_6 = arith.constant 0 : index
    %c0_7 = arith.constant 0 : index
    %10 = vector.load %arg4[%c0_6, %c0_7] : memref<128x128xbf16, #tpu.memory_space<vmem>>, vector<128x128xbf16>
    %cst_8 = arith.constant dense<0.000000e+00> : vector<256x128xf32>
    %11 = tpu.matmul %9, %10, %cst_8 {dimension_numbers = #tpu.dot_dimension_numbers<[1], [0], [0], [1], [0, 0, 1, 1], [], []>} : vector<256x128xbf16>, vector<128x128xbf16>, vector<256x128xf32> -> vector<256x128xf32>
    %c0_9 = arith.constant 0 : index
    %c0_10 = arith.constant 0 : index
    %12 = vector.load %arg5[%c0_9, %c0_10] : memref<1x128xf32, #tpu.memory_space<vmem>>, vector<1x128xf32>
    %13 = vector.broadcast %12 : vector<1x128xf32> to vector<256x128xf32>
    %14 = arith.addf %11, %13 : vector<256x128xf32>
    %cst_11 = arith.constant 0.000000e+00 : f32
    %15 = vector.broadcast %cst_11 : f32 to vector<256x128xf32>
    %16 = arith.maximumf %14, %15 : vector<256x128xf32>
    %17 = arith.truncf %16 : vector<256x128xf32> to vector<256x128xbf16>
    %c0_12 = arith.constant 0 : index
    %c0_13 = arith.constant 0 : index
    %18 = vector.load %arg6[%c0_12, %c0_13] : memref<128x128xbf16, #tpu.memory_space<vmem>>, vector<128x128xbf16>
    %cst_14 = arith.constant dense<0.000000e+00> : vector<256x128xf32>
    %19 = tpu.matmul %17, %18, %cst_14 {dimension_numbers = #tpu.dot_dimension_numbers<[1], [0], [0], [1], [0, 0, 1, 1], [], []>} : vector<256x128xbf16>, vector<128x128xbf16>, vector<256x128xf32> -> vector<256x128xf32>
    %c0_15 = arith.constant 0 : index
    %c0_16 = arith.constant 0 : index
    %20 = vector.load %arg7[%c0_15, %c0_16] : memref<1x128xf32, #tpu.memory_space<vmem>>, vector<1x128xf32>
    %21 = vector.broadcast %20 : vector<1x128xf32> to vector<256x128xf32>
    %22 = arith.addf %19, %21 : vector<256x128xf32>
    %cst_17 = arith.constant 0.000000e+00 : f32
    %23 = vector.broadcast %cst_17 : f32 to vector<256x128xf32>
    %24 = arith.maximumf %22, %23 : vector<256x128xf32>
    %c0_18 = arith.constant 0 : index
    %c0_19 = arith.constant 0 : index
    %25 = vector.load %arg8[%c0_18, %c0_19] : memref<1x128xf32, #tpu.memory_space<vmem>>, vector<1x128xf32>
    %26 = vector.broadcast %25 : vector<1x128xf32> to vector<256x128xf32>
    %27 = arith.mulf %24, %26 : vector<256x128xf32>
    %cst_20 = arith.constant dense<0.000000e+00> : vector<256xf32>
    %28 = vector.multi_reduction <add>, %27, %cst_20 [1] : vector<256x128xf32> to vector<256xf32>
    %29 = vector.shape_cast %28 : vector<256xf32> to vector<256x1xf32>
    %c0_21 = arith.constant 0 : index
    %c0_22 = arith.constant 0 : index
    %30 = vector.load %arg9[%c0_21, %c0_22] : memref<1x1xf32, #tpu.memory_space<vmem>>, vector<1x1xf32>
    %31 = vector.broadcast %30 : vector<1x1xf32> to vector<256x1xf32>
    %32 = arith.addf %29, %31 : vector<256x1xf32>
    %33 = arith.negf %32 : vector<256x1xf32>
    %34 = math.exp %33 : vector<256x1xf32>
    %cst_23 = arith.constant 1.000000e+00 : f32
    %35 = vector.broadcast %cst_23 : f32 to vector<256x1xf32>
    %36 = arith.addf %35, %34 : vector<256x1xf32>
    %37 = arith.divf %35, %36 : vector<256x1xf32>
    %38 = tpu.transpose %37, [1, 0] : vector<256x1xf32> -> vector<1x256xf32>
    %c0_24 = arith.constant 0 : index
    %c0_25 = arith.constant 0 : index
    %39 = vector.load %arg10[%c0_24, %c0_25] : memref<1x256xf32, #tpu.memory_space<vmem>>, vector<1x256xf32>
    tpu.vector_store %arg10[%c0_24, %c0_25], %38 {strides = array<i32>} : memref<1x256xf32, #tpu.memory_space<vmem>>, vector<1x256xf32>,
    return
  }
  func.func @transform_0(%arg0: i32) -> (i32, i32) {
    %c0_i32 = arith.constant 0 : i32
    %c0_i32_0 = arith.constant 0 : i32
    return %arg0, %c0_i32 : i32, i32
  }
  func.func @transform_1(%arg0: i32) -> (i32, i32) {
    %c0_i32 = arith.constant 0 : i32
    %c0_i32_0 = arith.constant 0 : i32
    %c0_i32_1 = arith.constant 0 : i32
    return %c0_i32, %c0_i32_0 : i32, i32
  }
  func.func @transform_2(%arg0: i32) -> (i32, i32) {
    %c0_i32 = arith.constant 0 : i32
    %c0_i32_0 = arith.constant 0 : i32
    %c0_i32_1 = arith.constant 0 : i32
    return %c0_i32, %c0_i32_0 : i32, i32
  }
  func.func @transform_3(%arg0: i32) -> (i32, i32) {
    %c0_i32 = arith.constant 0 : i32
    %c0_i32_0 = arith.constant 0 : i32
    %c0_i32_1 = arith.constant 0 : i32
    return %c0_i32, %c0_i32_0 : i32, i32
  }
  func.func @transform_4(%arg0: i32) -> (i32, i32) {
    %c0_i32 = arith.constant 0 : i32
    %c0_i32_0 = arith.constant 0 : i32
    %c0_i32_1 = arith.constant 0 : i32
    return %c0_i32, %c0_i32_0 : i32, i32
  }
  func.func @transform_5(%arg0: i32) -> (i32, i32) {
    %c0_i32 = arith.constant 0 : i32
    %c0_i32_0 = arith.constant 0 : i32
    %c0_i32_1 = arith.constant 0 : i32
    return %c0_i32, %c0_i32_0 : i32, i32
  }
  func.func @transform_6(%arg0: i32) -> (i32, i32) {
    %c0_i32 = arith.constant 0 : i32
    %c0_i32_0 = arith.constant 0 : i32
    %c0_i32_1 = arith.constant 0 : i32
    return %c0_i32, %c0_i32_0 : i32, i32
  }
  func.func @transform_7(%arg0: i32) -> (i32, i32) {
    %c0_i32 = arith.constant 0 : i32
    %c0_i32_0 = arith.constant 0 : i32
    %c0_i32_1 = arith.constant 0 : i32
    return %c0_i32, %c0_i32_0 : i32, i32
  }
  func.func @transform_8(%arg0: i32) -> (i32, i32) {
    %c0_i32 = arith.constant 0 : i32
    %c0_i32_0 = arith.constant 0 : i32
    %c0_i32_1 = arith.constant 0 : i32
    return %c0_i32, %c0_i32_0 : i32, i32
  }
  func.func @transform_9(%arg0: i32) -> (i32, i32) {
    %c0_i32 = arith.constant 0 : i32
    %c0_i32_0 = arith.constant 0 : i32
    return %c0_i32, %arg0 : i32, i32
  }
}

</mosaic_0001>

<bundles_post_ra>
// kernel: tpu_custom_call.1
= control target key start
LH: loop header
LB: loop body
LE: loop exit
PB: predicated region body
PF: predicated region fallthrough
CT: control target
= control target key end

     0   :  { %s2310_s0 = inlined_call_operand.hbm [shape: f32[256,128], index: 0, kind: input, shape index: {}]   ;;  %s2311_s1 = inlined_call_operand.hbm [shape: bf16[128,128], index: 1, kind: input, shape index: {}]   ;;  %s2312_s2 = inlined_call_operand.vmem [shape: f32[1,128], index: 2, kind: input, shape index: {}]   ;;  %s2313_s3 = inlined_call_operand.hbm [shape: bf16[128,128], index: 3, kind: input, shape index: {}]   ;;  %s2314_s4 = inlined_call_operand.vmem [shape: f32[1,128], index: 4, kind: input, shape index: {}]   ;;  %s2315_s5 = inlined_call_operand.hbm [shape: bf16[128,128], index: 5, kind: input, shape index: {}]   ;;  %s2316_s6 = inlined_call_operand.vmem [shape: f32[1,128], index: 6, kind: input, shape index: {}]   ;;  %s2317_s7 = inlined_call_operand.vmem [shape: f32[1,128], index: 7, kind: input, shape index: {}]   ;;  %s2318_s8 = inlined_call_operand.<no memory space> [shape: f32[1,1], index: 8, kind: input, shape index: {}]   ;;  %s2319_s9 = inlined_call_operand.hbm [shape: f32[1,256], index: 9, kind: output, shape index: {}]  }
   0x1   :  { %v14_v0 = vstv %s2318_s8 }
   0x2   :  { %15 = vst [vmem:[#allocation2] sm:$0x1] %v14_v0 }
   0x3   :  { %16 = vsyncpa [#allocation4], 0 }
   0x4   :  { %17 = vsyncpa [#allocation7], 0 }
   0x5   :  { %18 = vsyncpa [#allocation10], 0 }
   0x6   :  { %19 = vsyncpa [#allocation5], 0  ;;  %s1974_s11 = smov [#allocation6]   ;;  %s1856_s15 = scalar_lea.hbm %s2311_s1, 1024 }
   0x7   :  { %s37_s12 = sshll.u32 %s1974_s11, 4  ;;  %p1857_p0 = scmp.ne.s32.totalorder %s2311_s1, %s1856_s15  ;;  %s38_s12 = int_to_ptr.vmem [resolvable:$true] %s37_s12 }
   0x8   :  { %p1860_p1 = scmp.lt.u32.totalorder %s1856_s15, %s2311_s1 }
   0xa   :  { %p1862_p2 = pnand %p1860_p1, %p1857_p0 }
   0xc   :  { %1865 = shalt.err (!%p1862_p2)
}
   0xd   :  { %s1866_s8 = scalar_lea.vmem %s38_s12, 1024  ;;  %p1871_p4 = scmp.lt.s32.totalorder %s38_s12, %s38_s12 }
   0xe   :  { %p1867_p3 = scmp.ne.s32.totalorder %s38_s12, %s1866_s8  ;;  %p1872_p5 = scmp.lt.s32.totalorder %s1866_s8, %s1866_s8 }
  0x10   :  { %p1873_p6 = por %p1872_p5, %p1871_p4 }
  0x12   :  { %p1874_p7 = pnand %p1873_p6, %p1867_p3 }
  0x14   :  { %1877 = shalt.err (!%p1874_p7)
}
  0x15   :  { %s1975_s20 = smov 64   ;;  %s1976_s21 = smov 4  }
  0x16   :  { %43 = dma.hbm_to_vmem [thread:$0]  %s2311_s1, 1024, %s38_s12, [#allocation7], %s1975_s20, %s1975_s20, %s1976_s21  }
  0x17   :  { %s1977_s24 = smov [#allocation3]   ;;  %s1878_s28 = scalar_lea.hbm %s2310_s0, 4096 }
  0x18   :  { %s25_s25 = sshll.u32 %s1977_s24, 4  ;;  %p1879_p8 = scmp.ne.s32.totalorder %s2310_s0, %s1878_s28  ;;  %s26_s25 = int_to_ptr.vmem [resolvable:$true] %s25_s25 }
  0x19   :  { %p1882_p9 = scmp.lt.u32.totalorder %s1878_s28, %s2310_s0 }
  0x1b   :  { %p1884_p10 = pnand %p1882_p9, %p1879_p8 }
  0x1d   :  { %1887 = shalt.err (!%p1884_p10)
}
  0x1e   :  { %s1888_s13 = scalar_lea.vmem %s26_s25, 4096  ;;  %p1893_p12 = scmp.lt.s32.totalorder %s26_s25, %s26_s25 }
  0x1f   :  { %p1889_p11 = scmp.ne.s32.totalorder %s26_s25, %s1888_s13  ;;  %p1894_p13 = scmp.lt.s32.totalorder %s1888_s13, %s1888_s13 }
  0x21   :  { %p1895_p0 = por %p1894_p13, %p1893_p12 }
  0x23   :  { %p1896_p1 = pnand %p1895_p0, %p1889_p11 }
  0x25   :  { %1899 = shalt.err (!%p1896_p1)
}
  0x26   :  { %s1978_s1 = smov 128   ;;  %s1979_s12 = smov 8  }
  0x27   :  { %31 = dma.hbm_to_vmem [thread:$0]  %s2310_s0, 4096, %s26_s25, [#allocation4], %s1978_s1, %s1978_s1, %s1979_s12  }
  0x28   :  { %s1980_s16 = smov [#allocation8]   ;;  %s1981_s18 = smov [#allocation9]  }
  0x29   :  { %s51_s17 = sshll.u32 %s1980_s16, 4  ;;  %s65_s19 = sshll.u32 %s1981_s18, 4  ;;  %s52_s17 = int_to_ptr.vmem [resolvable:$true] %s51_s17  ;;  %s2064_s19 = int_to_ptr.vmem [resolvable:$true] %s65_s19 }
  0x2a   :  { %s1900_s23 = scalar_lea.hbm %s2313_s3, 1024 }
  0x2b   :  { %p1901_p2 = scmp.ne.s32.totalorder %s2313_s3, %s1900_s23  ;;  %p1904_p3 = scmp.lt.u32.totalorder %s1900_s23, %s2313_s3 }
  0x2d   :  { %p1906_p4 = pnand %p1904_p3, %p1901_p2 }
  0x2f   :  { %1909 = shalt.err (!%p1906_p4)
}
  0x30   :  { %s1910_s0 = scalar_lea.vmem %s52_s17, 1024  ;;  %p1915_p6 = scmp.lt.s32.totalorder %s52_s17, %s52_s17 }
  0x31   :  { %p1911_p5 = scmp.ne.s32.totalorder %s52_s17, %s1910_s0  ;;  %p1916_p7 = scmp.lt.s32.totalorder %s1910_s0, %s1910_s0 }
  0x33   :  { %p1917_p8 = por %p1916_p7, %p1915_p6 }
  0x35   :  { %p1918_p9 = pnand %p1917_p8, %p1911_p5 }
  0x37   :  { %1921 = shalt.err (!%p1918_p9)
}
  0x38   :  { %57 = dma.hbm_to_vmem [thread:$0]  %s2313_s3, 1024, %s52_s17, [#allocation7], %s1975_s20, %s1975_s20, %s1976_s21  }
  0x39   :  { %s1922_s11 = scalar_lea.hbm %s2315_s5, 1024 }
  0x3a   :  { %p1923_p10 = scmp.ne.s32.totalorder %s2315_s5, %s1922_s11  ;;  %p1926_p11 = scmp.lt.u32.totalorder %s1922_s11, %s2315_s5 }
  0x3c   :  { %p1928_p12 = pnand %p1926_p11, %p1923_p10 }
  0x3e   :  { %1931 = shalt.err (!%p1928_p12)
}
  0x3f   :  { %s1932_s15 = scalar_lea.vmem %s2064_s19, 1024  ;;  %p1937_p0 = scmp.lt.s32.totalorder %s2064_s19, %s2064_s19 }
  0x40   :  { %p1933_p13 = scmp.ne.s32.totalorder %s2064_s19, %s1932_s15  ;;  %p1938_p1 = scmp.lt.s32.totalorder %s1932_s15, %s1932_s15 }
  0x42   :  { %p1939_p2 = por %p1938_p1, %p1937_p0 }
  0x44   :  { %p1940_p3 = pnand %p1939_p2, %p1933_p13 }
  0x46   :  { %1943 = shalt.err (!%p1940_p3)
}
  0x47   :  { %71 = dma.hbm_to_vmem [thread:$0]  %s2315_s5, 1024, %s2064_s19, [#allocation10], %s1975_s20, %s1975_s20, %s1976_s21  }
  0x48   :  { %1966 = dma.done.wait [#allocation4], 4096  }
  0x49   :  { %1967 = vsyncadd [#allocation4], 4294963200 }
  0x4a   :  { %1968 = dma.done.wait [#allocation7], 2048  }
  0x4b   :  { %1969 = vsyncadd [#allocation7], 4294965248 }
  0x4c   :  { %1970 = dma.done.wait [#allocation10], 1024  }
  0x4d   :  { %1971 = vsyncadd [#allocation10], 4294966272  ;;  %v1704_v1 = vld [vmem:[#allocation6] sm:$0xff]   ;;  %v1705_v2 = vld [vmem:[#allocation6 + $0x8] sm:$0xff]  }
  0x4e   :  { %1534 = vmatprep.subr.bf16.mxu0 %v1704_v1  ;;  %1678 = vmatprep.subr.bf16.mxu1 %v1704_v1  ;;  %v1706_v3 = vld [vmem:[#allocation6 + $0x10] sm:$0xff]   ;;  %v1707_v4 = vld [vmem:[#allocation6 + $0x18] sm:$0xff]   ;;  %v91_v5 = vld [vmem:[#allocation3] sm:$0xff] }
  0x4f   :  { %1535 = vmatpush3.bf16.msra.mxu0 %v1704_v1  ;;  %1686 = vmatpush3.bf16.msra.mxu1 %v1704_v1  ;;  %v92_v6 = vld [vmem:[#allocation3 + $0x8] sm:$0xff]  ;;  %v1708_v8 = vld [vmem:[#allocation6 + $0x20] sm:$0xff]   ;;  %v1710_v13 = vld [vmem:[#allocation6 + $0x30] sm:$0xff]  }
  0x50   :  { %1536 = vmatprep.subr.bf16.mxu0 %v1705_v2  ;;  %1679 = vmatprep.subr.bf16.mxu1 %v1705_v2  ;;  %v123_v7 = vpack.c.bf16 %v92_v6, %v91_v5  ;;  %v107_v9 = vld [vmem:[#allocation3 + $0x80] sm:$0xff]  ;;  %v108_v10 = vld [vmem:[#allocation3 + $0x88] sm:$0xff]  ;;  %v1711_v14 = vld [vmem:[#allocation6 + $0x38] sm:$0xff]  }
  0x51   :  { %v131_v11 = vpack.c.bf16 %v108_v10, %v107_v9  ;;  %v1709_v12 = vld [vmem:[#allocation6 + $0x28] sm:$0xff]   ;;  %v93_v15 = vld [vmem:[#allocation3 + $0x10] sm:$0xff]  ;;  %v94_v16 = vld [vmem:[#allocation3 + $0x18] sm:$0xff] }
  0x52   :  { %1550 = vmatprep.mubr.bf16.mxu0 %v123_v7  ;;  %v95_v17 = vld [vmem:[#allocation3 + $0x20] sm:$0xff]  ;;  %v96_v18 = vld [vmem:[#allocation3 + $0x28] sm:$0xff]  ;;  %v109_v19 = vld [vmem:[#allocation3 + $0x90] sm:$0xff]  ;;  %v124_v24 = vpack.c.bf16 %v94_v16, %v93_v15 }
  0x53   :  { %1537 = vmatpush3.bf16.msra.mxu0 %v1705_v2  ;;  %1687 = vmatpush3.bf16.msra.mxu1 %v1705_v2  ;;  %v110_v20 = vld [vmem:[#allocation3 + $0x98] sm:$0xff]  ;;  %v111_v21 = vld [vmem:[#allocation3 + $0xa0] sm:$0xff]  ;;  %v112_v22 = vld [vmem:[#allocation3 + $0xa8] sm:$0xff]  ;;  %v125_v25 = vpack.c.bf16 %v96_v18, %v95_v17 }
  0x54   :  { %1538 = vmatprep.subr.bf16.mxu0 %v1706_v3  ;;  %1680 = vmatprep.subr.bf16.mxu1 %v1706_v3  ;;  %v1712_v23 = vld [vmem:[#allocation8] sm:$0xff]   ;;  %v132_v26 = vpack.c.bf16 %v110_v20, %v109_v19  ;;  %v133_v27 = vpack.c.bf16 %v112_v22, %v111_v21  ;;  %v1713_v28 = vld [vmem:[#allocation8 + $0x8] sm:$0xff]   ;;  %v97_v29 = vld [vmem:[#allocation3 + $0x30] sm:$0xff] }
  0x55   :  { %1566 = vmatprep.mubr.bf16.mxu1 %v131_v11  ;;  %v98_v30 = vld [vmem:[#allocation3 + $0x38] sm:$0xff]  ;;  %v99_v31 = vld [vmem:[#allocation3 + $0x40] sm:$0xff]  ;;  %v100_v32 = vld [vmem:[#allocation3 + $0x48] sm:$0xff] }
  0x56   :  { %v113_v33 = vld [vmem:[#allocation3 + $0xb0] sm:$0xff]  ;;  %v114_v34 = vld [vmem:[#allocation3 + $0xb8] sm:$0xff]  ;;  %v115_v35 = vld [vmem:[#allocation3 + $0xc0] sm:$0xff]  ;;  %v126_v38 = vpack.c.bf16 %v98_v30, %v97_v29  ;;  %v127_v39 = vpack.c.bf16 %v100_v32, %v99_v31 }
  0x57   :  { %1539 = vmatpush3.bf16.msra.mxu0 %v1706_v3  ;;  %1688 = vmatpush3.bf16.msra.mxu1 %v1706_v3  ;;  %v116_v36 = vld [vmem:[#allocation3 + $0xc8] sm:$0xff]  ;;  %v1714_v37 = vld [vmem:[#allocation8 + $0x10] sm:$0xff]   ;;  %v134_v40 = vpack.c.bf16 %v114_v34, %v113_v33  ;;  %v1715_v42 = vld [vmem:[#allocation8 + $0x18] sm:$0xff]  }
  0x58   :  { %1540 = vmatprep.subr.bf16.mxu0 %v1707_v4  ;;  %1681 = vmatprep.subr.bf16.mxu1 %v1707_v4  ;;  %v135_v41 = vpack.c.bf16 %v116_v36, %v115_v35  ;;  %v101_v43 = vld [vmem:[#allocation3 + $0x50] sm:$0xff]  ;;  %v102_v44 = vld [vmem:[#allocation3 + $0x58] sm:$0xff]  ;;  %v103_v45 = vld [vmem:[#allocation3 + $0x60] sm:$0xff] }
  0x59   :  { %v104_v46 = vld [vmem:[#allocation3 + $0x68] sm:$0xff]  ;;  %v117_v47 = vld [vmem:[#allocation3 + $0xd0] sm:$0xff]  ;;  %v118_v48 = vld [vmem:[#allocation3 + $0xd8] sm:$0xff]  ;;  %v128_v52 = vpack.c.bf16 %v102_v44, %v101_v43 }
  0x5a   :  { %v119_v49 = vld [vmem:[#allocation3 + $0xe0] sm:$0xff]  ;;  %v120_v50 = vld [vmem:[#allocation3 + $0xe8] sm:$0xff]  ;;  %v129_v53 = vpack.c.bf16 %v104_v46, %v103_v45  ;;  %v136_v54 = vpack.c.bf16 %v118_v48, %v117_v47  ;;  %v105_v57 = vld [vmem:[#allocation3 + $0x70] sm:$0xff] }
  0x5b   :  { %1541 = vmatpush3.bf16.msra.mxu0 %v1707_v4  ;;  %1689 = vmatpush3.bf16.msra.mxu1 %v1707_v4  ;;  %v1716_v51 = vld [vmem:[#allocation8 + $0x20] sm:$0xff]   ;;  %v137_v55 = vpack.c.bf16 %v120_v50, %v119_v49  ;;  %v1717_v56 = vld [vmem:[#allocation8 + $0x28] sm:$0xff]   ;;  %v106_v58 = vld [vmem:[#allocation3 + $0x78] sm:$0xff] }
  0x5c   :  { %1542 = vmatprep.subr.bf16.mxu0 %v1708_v8  ;;  %1682 = vmatprep.subr.bf16.mxu1 %v1708_v8  ;;  %v121_v59 = vld [vmem:[#allocation3 + $0xf0] sm:$0xff]  ;;  %v122_v60 = vld [vmem:[#allocation3 + $0xf8] sm:$0xff]  ;;  %v130_v61 = vpack.c.bf16 %v106_v58, %v105_v57  ;;  %v1720_v1 = vld [vmem:[#allocation9] sm:$0xff]  }
  0x5d   :  { %v138_v62 = vpack.c.bf16 %v122_v60, %v121_v59  ;;  %v1718_v63 = vld [vmem:[#allocation8 + $0x30] sm:$0xff]   ;;  %v1719_v0 = vld [vmem:[#allocation8 + $0x38] sm:$0xff]   ;;  %v1721_v2 = vld [vmem:[#allocation9 + $0x8] sm:$0xff]  }
  0x5e   :  { %v1722_v3 = vld [vmem:[#allocation9 + $0x10] sm:$0xff]   ;;  %v1723_v4 = vld [vmem:[#allocation9 + $0x18] sm:$0xff]   ;;  %v1724_v5 = vld [vmem:[#allocation9 + $0x20] sm:$0xff]  }
  0x5f   :  { %1543 = vmatpush3.bf16.msra.mxu0 %v1708_v8  ;;  %1690 = vmatpush3.bf16.msra.mxu1 %v1708_v8  ;;  %v1725_v6 = vld [vmem:[#allocation9 + $0x28] sm:$0xff]   ;;  %v2104_v7 = vld [vmem:[%s2312_s2] ss:$0 sm:$0xff] }
  0x60   :  { %1544 = vmatprep.subr.bf16.mxu0 %v1709_v12  ;;  %1683 = vmatprep.subr.bf16.mxu1 %v1709_v12 }
  0x63   :  { %1545 = vmatpush3.bf16.msra.mxu0 %v1709_v12  ;;  %1691 = vmatpush3.bf16.msra.mxu1 %v1709_v12 }
  0x64   :  { %1546 = vmatprep.subr.bf16.mxu0 %v1710_v13  ;;  %1684 = vmatprep.subr.bf16.mxu1 %v1710_v13 }
  0x67   :  { %1547 = vmatpush3.bf16.msra.mxu0 %v1710_v13  ;;  %1692 = vmatpush3.bf16.msra.mxu1 %v1710_v13 }
  0x68   :  { %1548 = vmatprep.subr.bf16.mxu0 %v1711_v14  ;;  %1685 = vmatprep.subr.bf16.mxu1 %v1711_v14 }
  0x6b   :  { %1549 = vmatpush3.bf16.msra.mxu0 %v1711_v14  ;;  %1693 = vmatpush3.bf16.msra.mxu1 %v1711_v14 }
  0x6c   :  { %1582 = vmatprep.subr.bf16.mxu1 %v1712_v23  ;;  %1630 = vmatprep.subr.bf16.mxu0 %v1720_v1 }
  0x6e   :  { %1551 = vmatmul.mubr.bf16.vlgmr.msra.gmra.mrb[0].mxu0 %v124_v24  ;;  %1567 = vmatmul.mubr.bf16.vlgmr.msra.gmra.mrb[0].mxu1 %v132_v26 }
  0x6f   :  { %1554 = vmatprep.mubr.bf16.mxu0 %v125_v25  ;;  %1570 = vmatprep.mubr.bf16.mxu1 %v133_v27 }
  0x70   :  { %1583 = vmatpush3.bf16.msra.mxu1 %v1712_v23  ;;  %1631 = vmatpush3.bf16.msra.mxu0 %v1720_v1 }
  0x71   :  { %1584 = vmatprep.subr.bf16.mxu1 %v1713_v28  ;;  %1632 = vmatprep.subr.bf16.mxu0 %v1721_v2 }
  0x74   :  { %1585 = vmatpush3.bf16.msra.mxu1 %v1713_v28  ;;  %1633 = vmatpush3.bf16.msra.mxu0 %v1721_v2 }
  0x75   :  { %1586 = vmatprep.subr.bf16.mxu1 %v1714_v37  ;;  %1634 = vmatprep.subr.bf16.mxu0 %v1722_v3 }
  0x76   :  { %1555 = vmatmul.mubr.bf16.gmra.mrb[4].mxu0 %v126_v38  ;;  %1571 = vmatmul.mubr.bf16.gmra.mrb[4].mxu1 %v134_v40 }
  0x77   :  { %1558 = vmatprep.mubr.bf16.mxu0 %v127_v39  ;;  %1574 = vmatprep.mubr.bf16.mxu1 %v135_v41 }
  0x78   :  { %1587 = vmatpush3.bf16.msra.mxu1 %v1714_v37  ;;  %1635 = vmatpush3.bf16.msra.mxu0 %v1722_v3 }
  0x79   :  { %1588 = vmatprep.subr.bf16.mxu1 %v1715_v42  ;;  %1636 = vmatprep.subr.bf16.mxu0 %v1723_v4 }
  0x7c   :  { %1589 = vmatpush3.bf16.msra.mxu1 %v1715_v42  ;;  %1637 = vmatpush3.bf16.msra.mxu0 %v1723_v4 }
  0x7d   :  { %1590 = vmatprep.subr.bf16.mxu1 %v1716_v51  ;;  %1638 = vmatprep.subr.bf16.mxu0 %v1724_v5 }
  0x7e   :  { %1559 = vmatmul.mubr.bf16.gmra.mrb[8].mxu0 %v128_v52  ;;  %1575 = vmatmul.mubr.bf16.gmra.mrb[8].mxu1 %v136_v54 }
  0x7f   :  { %1562 = vmatprep.mubr.bf16.mxu0 %v129_v53  ;;  %1578 = vmatprep.mubr.bf16.mxu1 %v137_v55 }
  0x80   :  { %1591 = vmatpush3.bf16.msra.mxu1 %v1716_v51  ;;  %1639 = vmatpush3.bf16.msra.mxu0 %v1724_v5 }
  0x81   :  { %1592 = vmatprep.subr.bf16.mxu1 %v1717_v56  ;;  %1640 = vmatprep.subr.bf16.mxu0 %v1725_v6 }
  0x84   :  { %1593 = vmatpush3.bf16.msra.mxu1 %v1717_v56  ;;  %1641 = vmatpush3.bf16.msra.mxu0 %v1725_v6 }
  0x85   :  { %1594 = vmatprep.subr.bf16.mxu1 %v1718_v63 }
  0x86   :  { %1563 = vmatmul.mubr.bf16.gmra.mrb[12].mxu0 %v130_v61  ;;  %1579 = vmatmul.mubr.bf16.gmra.mrb[12].mxu1 %v138_v62 }
  0x88   :  { %1595 = vmatpush3.bf16.msra.mxu1 %v1718_v63 }
  0x89   :  { %1596 = vmatprep.subr.bf16.mxu1 %v1719_v0 }
  0x8c   :  { %1597 = vmatpush3.bf16.msra.mxu1 %v1719_v0 }
 0x141   :  { %v1552_v8 = vpop.f32.mrb[0].mxu0  ;;  %v1568_v11 = vpop.f32.mrb[0].mxu1 }
 0x142   :  { %v253_v9 = vadd.f32 %v1552_v8, %v2104_v7  ;;  %v244_v10 = vpop.f32.mrb[1].mxu0  ;;  %v317_v14 = vadd.f32 %v1568_v11, %v2104_v7  ;;  %v308_v15 = vpop.f32.mrb[1].mxu1 }
 0x143   :  { %v245_v12 = vadd.f32 %v2104_v7, %v244_v10  ;;  %v1553_v13 = vpop.f32.mrb[2].mxu0  ;;  %v309_v18 = vadd.f32 %v2104_v7, %v308_v15  ;;  %v1569_v19 = vpop.f32.mrb[2].mxu1 }
 0x144   :  { %v256_v16 = vadd.f32 %v1553_v13, %v2104_v7  ;;  %v247_v17 = vpop.f32.mrb[3].mxu0  ;;  %v389_v21 = vmax.f32 %v317_v14, 0.0  ;;  %v320_v22 = vadd.f32 %v1569_v19, %v2104_v7  ;;  %v311_v23 = vpop.f32.mrb[3].mxu1  ;;  %v373_v24 = vmax.f32 %v253_v9, 0.0 }
 0x145   :  { %v248_v20 = vadd.f32 %v2104_v7, %v247_v17  ;;  %v387_v26 = vmax.f32 %v309_v18, 0.0  ;;  %v312_v27 = vadd.f32 %v2104_v7, %v311_v23  ;;  %v371_v28 = vmax.f32 %v245_v12, 0.0 }
 0x146   :  { %v374_v25 = vmax.f32 %v256_v16, 0.0  ;;  %v390_v30 = vmax.f32 %v320_v22, 0.0 }
 0x147   :  { %v372_v29 = vmax.f32 %v248_v20, 0.0  ;;  %v388_v32 = vmax.f32 %v312_v27, 0.0 }
 0x148   :  { %v404_v31 = vpack.c.bf16 %v374_v25, %v373_v24  ;;  %v2114_v35 = vpack.c.bf16 %v390_v30, %v389_v21 }
 0x149   :  { %v403_v33 = vpack.c.bf16 %v372_v29, %v371_v28  ;;  %v1556_v34 = vpop.f32.mrb[4].mxu0  ;;  %v2117_v38 = vpack.c.bf16 %v388_v32, %v387_v26  ;;  %v1572_v39 = vpop.f32.mrb[4].mxu1 }
 0x14a   :  { %v269_v36 = vadd.f32 %v1556_v34, %v2104_v7  ;;  %v260_v37 = vpop.f32.mrb[5].mxu0  ;;  %v333_v42 = vadd.f32 %v1572_v39, %v2104_v7  ;;  %v324_v43 = vpop.f32.mrb[5].mxu1 }
 0x14b   :  { %v261_v40 = vadd.f32 %v2104_v7, %v260_v37  ;;  %v1557_v41 = vpop.f32.mrb[6].mxu0  ;;  %1598 = vmatprep.mubr.bf16.mxu1 %v403_v33  ;;  %v325_v46 = vadd.f32 %v2104_v7, %v324_v43  ;;  %v1573_v47 = vpop.f32.mrb[6].mxu1 }
 0x14c   :  { %v272_v44 = vadd.f32 %v1557_v41, %v2104_v7  ;;  %v263_v45 = vpop.f32.mrb[7].mxu0  ;;  %1599 = vmatmul.mubr.bf16.vlgmr.msra.gmra.mrb[16].mxu1 %v404_v31  ;;  %v393_v49 = vmax.f32 %v333_v42, 0.0  ;;  %v336_v50 = vadd.f32 %v1573_v47, %v2104_v7  ;;  %v327_v51 = vpop.f32.mrb[7].mxu1  ;;  %v377_v52 = vmax.f32 %v269_v36, 0.0 }
 0x14d   :  { %v264_v48 = vadd.f32 %v2104_v7, %v263_v45  ;;  %v391_v54 = vmax.f32 %v325_v46, 0.0  ;;  %v328_v55 = vadd.f32 %v2104_v7, %v327_v51  ;;  %v375_v56 = vmax.f32 %v261_v40, 0.0 }
 0x14e   :  { %v378_v53 = vmax.f32 %v272_v44, 0.0  ;;  %v394_v58 = vmax.f32 %v336_v50, 0.0 }
 0x14f   :  { %v376_v57 = vmax.f32 %v264_v48, 0.0  ;;  %v392_v60 = vmax.f32 %v328_v55, 0.0 }
 0x150   :  { %v406_v59 = vpack.c.bf16 %v378_v53, %v377_v52  ;;  %v2126_v63 = vpack.c.bf16 %v394_v58, %v393_v49 }
 0x151   :  { %v405_v61 = vpack.c.bf16 %v376_v57, %v375_v56  ;;  %v1560_v62 = vpop.f32.mrb[8].mxu0  ;;  %v413_v2 = vpack.c.bf16 %v392_v60, %v391_v54  ;;  %v1576_v3 = vpop.f32.mrb[8].mxu1  ;;  %v2150_v60 = vld [vmem:[%s2314_s4] ss:$0 sm:$0xff] }
 0x152   :  { %v285_v0 = vadd.f32 %v1560_v62, %v2104_v7  ;;  %v276_v1 = vpop.f32.mrb[9].mxu0  ;;  %v349_v6 = vadd.f32 %v1576_v3, %v2104_v7  ;;  %v340_v8 = vpop.f32.mrb[9].mxu1 }
 0x153   :  { %v277_v4 = vadd.f32 %v2104_v7, %v276_v1  ;;  %v1561_v5 = vpop.f32.mrb[10].mxu0  ;;  %1602 = vmatprep.mubr.bf16.mxu1 %v405_v61  ;;  %v341_v11 = vadd.f32 %v2104_v7, %v340_v8  ;;  %v1577_v12 = vpop.f32.mrb[10].mxu1 }
 0x154   :  { %v288_v9 = vadd.f32 %v1561_v5, %v2104_v7  ;;  %v279_v10 = vpop.f32.mrb[11].mxu0  ;;  %1603 = vmatmul.mubr.bf16.gmra.mrb[20].mxu1 %v406_v59  ;;  %v397_v14 = vmax.f32 %v349_v6, 0.0  ;;  %v352_v15 = vadd.f32 %v1577_v12, %v2104_v7  ;;  %v343_v16 = vpop.f32.mrb[11].mxu1  ;;  %v381_v17 = vmax.f32 %v285_v0, 0.0  ;;  %v1727_v59 = vld [vmem:[#allocation9 + $0x38] sm:$0xff]  }
 0x155   :  { %v280_v13 = vadd.f32 %v2104_v7, %v279_v10  ;;  %v395_v19 = vmax.f32 %v341_v11, 0.0  ;;  %v344_v20 = vadd.f32 %v2104_v7, %v343_v16  ;;  %v379_v21 = vmax.f32 %v277_v4, 0.0 }
 0x156   :  { %v382_v18 = vmax.f32 %v288_v9, 0.0  ;;  %v398_v23 = vmax.f32 %v352_v15, 0.0 }
 0x157   :  { %v380_v22 = vmax.f32 %v280_v13, 0.0  ;;  %v396_v25 = vmax.f32 %v344_v20, 0.0 }
 0x158   :  { %v408_v24 = vpack.c.bf16 %v382_v18, %v381_v17  ;;  %v416_v28 = vpack.c.bf16 %v398_v23, %v397_v14 }
 0x159   :  { %v407_v26 = vpack.c.bf16 %v380_v22, %v379_v21  ;;  %v1564_v27 = vpop.f32.mrb[12].mxu0  ;;  %v415_v31 = vpack.c.bf16 %v396_v25, %v395_v19  ;;  %v1580_v32 = vpop.f32.mrb[12].mxu1 }
 0x15a   :  { %v301_v29 = vadd.f32 %v1564_v27, %v2104_v7  ;;  %v292_v30 = vpop.f32.mrb[13].mxu0  ;;  %v365_v36 = vadd.f32 %v1580_v32, %v2104_v7  ;;  %v356_v37 = vpop.f32.mrb[13].mxu1 }
 0x15b   :  { %v293_v33 = vadd.f32 %v2104_v7, %v292_v30  ;;  %v1565_v34 = vpop.f32.mrb[14].mxu0  ;;  %1606 = vmatprep.mubr.bf16.mxu1 %v407_v26  ;;  %v357_v41 = vadd.f32 %v2104_v7, %v356_v37  ;;  %v1581_v42 = vpop.f32.mrb[14].mxu1 }
 0x15c   :  { %v304_v39 = vadd.f32 %v1565_v34, %v2104_v7  ;;  %v295_v40 = vpop.f32.mrb[15].mxu0  ;;  %1607 = vmatmul.mubr.bf16.gmra.mrb[24].mxu1 %v408_v24  ;;  %v401_v44 = vmax.f32 %v365_v36, 0.0  ;;  %v368_v45 = vadd.f32 %v1581_v42, %v2104_v7  ;;  %v359_v46 = vpop.f32.mrb[15].mxu1  ;;  %v385_v47 = vmax.f32 %v301_v29, 0.0 }
 0x15d   :  { %v296_v43 = vadd.f32 %v2104_v7, %v295_v40  ;;  %v399_v49 = vmax.f32 %v357_v41, 0.0  ;;  %v360_v50 = vadd.f32 %v2104_v7, %v359_v46  ;;  %v383_v51 = vmax.f32 %v293_v33, 0.0  ;;  %v1726_v7 = vld [vmem:[#allocation9 + $0x30] sm:$0xff]  }
 0x15e   :  { %v386_v48 = vmax.f32 %v304_v39, 0.0  ;;  %v402_v53 = vmax.f32 %v368_v45, 0.0  ;;  %1642 = vmatprep.subr.bf16.mxu0 %v1726_v7 }
 0x15f   :  { %v384_v52 = vmax.f32 %v296_v43, 0.0  ;;  %v400_v55 = vmax.f32 %v360_v50, 0.0  ;;  %1643 = vmatpush3.bf16.msra.mxu0 %v1726_v7 }
 0x160   :  { %v410_v54 = vpack.c.bf16 %v386_v48, %v385_v47  ;;  %v418_v57 = vpack.c.bf16 %v402_v53, %v401_v44  ;;  %1644 = vmatprep.subr.bf16.mxu0 %v1727_v59 }
 0x161   :  { %v409_v56 = vpack.c.bf16 %v384_v52, %v383_v51  ;;  %v417_v58 = vpack.c.bf16 %v400_v55, %v399_v49 }
 0x163   :  { %1610 = vmatprep.mubr.bf16.mxu1 %v409_v56  ;;  %1645 = vmatpush3.bf16.msra.mxu0 %v1727_v59 }
 0x164   :  { %1611 = vmatmul.mubr.bf16.gmra.mrb[28].mxu1 %v410_v54 }
 0x165   :  { %1614 = vmatprep.mubr.bf16.mxu1 %v2117_v38 }
 0x16c   :  { %1615 = vmatmul.mubr.bf16.gmra.mrb[32].mxu1 %v2114_v35 }
 0x16d   :  { %1618 = vmatprep.mubr.bf16.mxu1 %v413_v2 }
 0x174   :  { %1619 = vmatmul.mubr.bf16.gmra.mrb[36].mxu1 %v2126_v63 }
 0x175   :  { %1622 = vmatprep.mubr.bf16.mxu1 %v415_v31 }
 0x17c   :  { %1623 = vmatmul.mubr.bf16.gmra.mrb[40].mxu1 %v416_v28 }
 0x17d   :  { %1626 = vmatprep.mubr.bf16.mxu1 %v417_v58 }
 0x184   :  { %1627 = vmatmul.mubr.bf16.gmra.mrb[44].mxu1 %v418_v57 }
 0x21f   :  { %v1600_v38 = vpop.f32.mrb[16].mxu1 }
 0x220   :  { %v533_v35 = vadd.f32 %v1600_v38, %v2150_v60  ;;  %v524_v61 = vpop.f32.mrb[17].mxu1 }
 0x221   :  { %v525_v62 = vadd.f32 %v2150_v60, %v524_v61  ;;  %v1601_v63 = vpop.f32.mrb[18].mxu1 }
 0x222   :  { %v536_v0 = vadd.f32 %v1601_v63, %v2150_v60  ;;  %v527_v1 = vpop.f32.mrb[19].mxu1  ;;  %v653_v3 = vmax.f32 %v533_v35, 0.0 }
 0x223   :  { %v528_v2 = vadd.f32 %v2150_v60, %v527_v1  ;;  %v651_v5 = vmax.f32 %v525_v62, 0.0 }
 0x224   :  { %v654_v4 = vmax.f32 %v536_v0, 0.0 }
 0x225   :  { %v652_v6 = vmax.f32 %v528_v2, 0.0 }
 0x226   :  { %v684_v8 = vpack.c.bf16 %v654_v4, %v653_v3 }
 0x227   :  { %v683_v9 = vpack.c.bf16 %v652_v6, %v651_v5  ;;  %v1604_v10 = vpop.f32.mrb[20].mxu1 }
 0x228   :  { %v549_v11 = vadd.f32 %v1604_v10, %v2150_v60  ;;  %v540_v12 = vpop.f32.mrb[21].mxu1 }
 0x229   :  { %v541_v13 = vadd.f32 %v2150_v60, %v540_v12  ;;  %v1605_v14 = vpop.f32.mrb[22].mxu1  ;;  %1646 = vmatprep.mubr.bf16.mxu0 %v683_v9 }
 0x22a   :  { %v552_v15 = vadd.f32 %v1605_v14, %v2150_v60  ;;  %v543_v16 = vpop.f32.mrb[23].mxu1  ;;  %1647 = vmatmul.mubr.bf16.vlgmr.msra.gmra.mrb[16].mxu0 %v684_v8  ;;  %v657_v18 = vmax.f32 %v549_v11, 0.0 }
 0x22b   :  { %v544_v17 = vadd.f32 %v2150_v60, %v543_v16  ;;  %v655_v20 = vmax.f32 %v541_v13, 0.0 }
 0x22c   :  { %v658_v19 = vmax.f32 %v552_v15, 0.0 }
 0x22d   :  { %v656_v21 = vmax.f32 %v544_v17, 0.0 }
 0x22e   :  { %v686_v22 = vpack.c.bf16 %v658_v19, %v657_v18 }
 0x22f   :  { %v685_v23 = vpack.c.bf16 %v656_v21, %v655_v20  ;;  %v1608_v24 = vpop.f32.mrb[24].mxu1 }
 0x230   :  { %v565_v25 = vadd.f32 %v1608_v24, %v2150_v60  ;;  %v556_v26 = vpop.f32.mrb[25].mxu1 }
 0x231   :  { %v557_v27 = vadd.f32 %v2150_v60, %v556_v26  ;;  %v1609_v28 = vpop.f32.mrb[26].mxu1  ;;  %1650 = vmatprep.mubr.bf16.mxu0 %v685_v23 }
 0x232   :  { %v568_v29 = vadd.f32 %v1609_v28, %v2150_v60  ;;  %v559_v30 = vpop.f32.mrb[27].mxu1  ;;  %1651 = vmatmul.mubr.bf16.gmra.mrb[20].mxu0 %v686_v22  ;;  %v661_v32 = vmax.f32 %v565_v25, 0.0 }
 0x233   :  { %v560_v31 = vadd.f32 %v2150_v60, %v559_v30  ;;  %v659_v34 = vmax.f32 %v557_v27, 0.0 }
 0x234   :  { %v662_v33 = vmax.f32 %v568_v29, 0.0 }
 0x235   :  { %v660_v36 = vmax.f32 %v560_v31, 0.0 }
 0x236   :  { %v688_v37 = vpack.c.bf16 %v662_v33, %v661_v32 }
 0x237   :  { %v687_v39 = vpack.c.bf16 %v660_v36, %v659_v34  ;;  %v1612_v40 = vpop.f32.mrb[28].mxu1 }
 0x238   :  { %v581_v41 = vadd.f32 %v1612_v40, %v2150_v60  ;;  %v572_v42 = vpop.f32.mrb[29].mxu1 }
 0x239   :  { %v573_v43 = vadd.f32 %v2150_v60, %v572_v42  ;;  %v1613_v44 = vpop.f32.mrb[30].mxu1  ;;  %1654 = vmatprep.mubr.bf16.mxu0 %v687_v39 }
 0x23a   :  { %v584_v45 = vadd.f32 %v1613_v44, %v2150_v60  ;;  %v575_v46 = vpop.f32.mrb[31].mxu1  ;;  %1655 = vmatmul.mubr.bf16.gmra.mrb[24].mxu0 %v688_v37  ;;  %v665_v48 = vmax.f32 %v581_v41, 0.0 }
 0x23b   :  { %v576_v47 = vadd.f32 %v2150_v60, %v575_v46  ;;  %v663_v50 = vmax.f32 %v573_v43, 0.0 }
 0x23c   :  { %v666_v49 = vmax.f32 %v584_v45, 0.0 }
 0x23d   :  { %v664_v51 = vmax.f32 %v576_v47, 0.0  ;;  %v2187_v47 = vld [vmem:[%s2316_s6] ss:$0 sm:$0xff]  ;;  %s1983_s6 = smov [#allocation11]  }
 0x23e   :  { %v690_v52 = vpack.c.bf16 %v666_v49, %v665_v48 }
 0x23f   :  { %v689_v53 = vpack.c.bf16 %v664_v51, %v663_v50  ;;  %v1616_v54 = vpop.f32.mrb[32].mxu1 }
 0x240   :  { %v597_v55 = vadd.f32 %v1616_v54, %v2150_v60  ;;  %v588_v56 = vpop.f32.mrb[33].mxu1 }
 0x241   :  { %v589_v57 = vadd.f32 %v2150_v60, %v588_v56  ;;  %v1617_v58 = vpop.f32.mrb[34].mxu1  ;;  %1658 = vmatprep.mubr.bf16.mxu0 %v689_v53 }
 0x242   :  { %v600_v7 = vadd.f32 %v1617_v58, %v2150_v60  ;;  %v591_v59 = vpop.f32.mrb[35].mxu1  ;;  %1659 = vmatmul.mubr.bf16.gmra.mrb[28].mxu0 %v690_v52  ;;  %v669_v35 = vmax.f32 %v597_v55, 0.0 }
 0x243   :  { %v592_v38 = vadd.f32 %v2150_v60, %v591_v59  ;;  %v667_v62 = vmax.f32 %v589_v57, 0.0 }
 0x244   :  { %v670_v61 = vmax.f32 %v600_v7, 0.0 }
 0x245   :  { %v668_v63 = vmax.f32 %v592_v38, 0.0 }
 0x246   :  { %v692_v0 = vpack.c.bf16 %v670_v61, %v669_v35 }
 0x247   :  { %v691_v1 = vpack.c.bf16 %v668_v63, %v667_v62  ;;  %v1620_v2 = vpop.f32.mrb[36].mxu1 }
 0x248   :  { %v613_v3 = vadd.f32 %v1620_v2, %v2150_v60  ;;  %v604_v4 = vpop.f32.mrb[37].mxu1 }
 0x249   :  { %v605_v5 = vadd.f32 %v2150_v60, %v604_v4  ;;  %v1621_v6 = vpop.f32.mrb[38].mxu1  ;;  %1662 = vmatprep.mubr.bf16.mxu0 %v691_v1 }
 0x24a   :  { %v616_v8 = vadd.f32 %v1621_v6, %v2150_v60  ;;  %v607_v9 = vpop.f32.mrb[39].mxu1  ;;  %1663 = vmatmul.mubr.bf16.gmra.mrb[32].mxu0 %v692_v0  ;;  %v673_v11 = vmax.f32 %v613_v3, 0.0 }
 0x24b   :  { %v608_v10 = vadd.f32 %v2150_v60, %v607_v9  ;;  %v671_v13 = vmax.f32 %v605_v5, 0.0 }
 0x24c   :  { %v674_v12 = vmax.f32 %v616_v8, 0.0 }
 0x24d   :  { %v672_v14 = vmax.f32 %v608_v10, 0.0 }
 0x24e   :  { %v694_v15 = vpack.c.bf16 %v674_v12, %v673_v11 }
 0x24f   :  { %v693_v16 = vpack.c.bf16 %v672_v14, %v671_v13  ;;  %v1624_v17 = vpop.f32.mrb[40].mxu1 }
 0x250   :  { %v629_v18 = vadd.f32 %v1624_v17, %v2150_v60  ;;  %v620_v19 = vpop.f32.mrb[41].mxu1 }
 0x251   :  { %v621_v20 = vadd.f32 %v2150_v60, %v620_v19  ;;  %1666 = vmatprep.mubr.bf16.mxu0 %v693_v16  ;;  %v1625_v21 = vpop.f32.mrb[42].mxu1 }
 0x252   :  { %v677_v22 = vmax.f32 %v629_v18, 0.0  ;;  %v632_v23 = vadd.f32 %v1625_v21, %v2150_v60  ;;  %1667 = vmatmul.mubr.bf16.gmra.mrb[36].mxu0 %v694_v15  ;;  %v623_v24 = vpop.f32.mrb[43].mxu1 }
 0x253   :  { %v675_v25 = vmax.f32 %v621_v20, 0.0  ;;  %v624_v26 = vadd.f32 %v2150_v60, %v623_v24 }
 0x254   :  { %v678_v27 = vmax.f32 %v632_v23, 0.0 }
 0x255   :  { %v676_v28 = vmax.f32 %v624_v26, 0.0 }
 0x256   :  { %v696_v29 = vpack.c.bf16 %v678_v27, %v677_v22 }
 0x257   :  { %v695_v30 = vpack.c.bf16 %v676_v28, %v675_v25  ;;  %v1628_v31 = vpop.f32.mrb[44].mxu1 }
 0x258   :  { %v645_v32 = vadd.f32 %v1628_v31, %v2150_v60  ;;  %v636_v33 = vpop.f32.mrb[45].mxu1 }
 0x259   :  { %1670 = vmatprep.mubr.bf16.mxu0 %v695_v30  ;;  %v637_v34 = vadd.f32 %v2150_v60, %v636_v33  ;;  %v1629_v36 = vpop.f32.mrb[46].mxu1 }
 0x25a   :  { %1671 = vmatmul.mubr.bf16.gmra.mrb[40].mxu0 %v696_v29  ;;  %v681_v37 = vmax.f32 %v645_v32, 0.0  ;;  %v648_v39 = vadd.f32 %v1629_v36, %v2150_v60  ;;  %v639_v40 = vpop.f32.mrb[47].mxu1 }
 0x25b   :  { %v679_v41 = vmax.f32 %v637_v34, 0.0  ;;  %v640_v42 = vadd.f32 %v2150_v60, %v639_v40  ;;  %v2194_v60 = vld [vmem:[%s2317_s7] ss:$0 sm:$0xff]  ;;  %s1390_s7 = sshll.u32 %s1983_s6, 4  ;;  %s1391_s7 = int_to_ptr.vmem [resolvable:$true] %s1390_s7 }
 0x25c   :  { %v682_v43 = vmax.f32 %v648_v39, 0.0  ;;  %s1944_s8 = scalar_lea.vmem %s1391_s7, 32  ;;  %p1949_p5 = scmp.lt.s32.totalorder %s1391_s7, %s1391_s7 }
 0x25d   :  { %v680_v44 = vmax.f32 %v640_v42, 0.0  ;;  %p1945_p4 = scmp.ne.s32.totalorder %s1391_s7, %s1944_s8  ;;  %p1950_p6 = scmp.lt.s32.totalorder %s1944_s8, %s1944_s8 }
 0x25e   :  { %v698_v45 = vpack.c.bf16 %v682_v43, %v681_v37 }
 0x25f   :  { %v697_v46 = vpack.c.bf16 %v680_v44, %v679_v41  ;;  %p1951_p7 = por %p1950_p6, %p1949_p5 }
 0x261   :  { %1674 = vmatprep.mubr.bf16.mxu0 %v697_v46  ;;  %p1952_p8 = pnand %p1951_p7, %p1945_p4 }
 0x262   :  { %1675 = vmatmul.mubr.bf16.gmra.mrb[44].mxu0 %v698_v45 }
 0x2fd   :  { %v1648_v48 = vpop.f32.mrb[16].mxu0 }
 0x2fe   :  { %v813_v49 = vadd.f32 %v1648_v48, %v2187_v47  ;;  %v804_v50 = vpop.f32.mrb[17].mxu0 }
 0x2ff   :  { %v805_v51 = vadd.f32 %v2187_v47, %v804_v50  ;;  %v1649_v52 = vpop.f32.mrb[18].mxu0 }
 0x300   :  { %v933_v53 = vmax.f32 %v813_v49, 0.0  ;;  %v807_v54 = vpop.f32.mrb[19].mxu0  ;;  %v816_v57 = vadd.f32 %v1649_v52, %v2187_v47 }
 0x301   :  { %v808_v55 = vadd.f32 %v2187_v47, %v807_v54  ;;  %v931_v56 = vmax.f32 %v805_v51, 0.0 }
 0x302   :  { %v972_v58 = vmul.f32 %v2194_v60, %v933_v53  ;;  %v934_v35 = vmax.f32 %v816_v57, 0.0 }
 0x303   :  { %v932_v7 = vmax.f32 %v808_v55, 0.0  ;;  %v970_v63 = vmul.f32 %v2194_v60, %v931_v56 }
 0x304   :  { %1006 = vadd.xlane.f32.xlu0 %v972_v58  ;;  %v973_v4 = vmul.f32 %v2194_v60, %v934_v35 }
 0x305   :  { %v1652_v59 = vpop.f32.mrb[20].mxu0  ;;  %v971_v38 = vmul.f32 %v2194_v60, %v932_v7 }
 0x306   :  { %v829_v61 = vadd.f32 %v1652_v59, %v2187_v47  ;;  %v820_v62 = vpop.f32.mrb[21].mxu0 }
 0x307   :  { %v1653_v0 = vpop.f32.mrb[22].mxu0  ;;  %1004 = vadd.xlane.f32.xlu1 %v971_v38  ;;  %v821_v3 = vadd.f32 %v2187_v47, %v820_v62 }
 0x308   :  { %v823_v1 = vpop.f32.mrb[23].mxu0  ;;  %1002 = vadd.xlane.f32.xlu0 %v970_v63  ;;  %v937_v2 = vmax.f32 %v829_v61, 0.0  ;;  %v832_v8 = vadd.f32 %v1653_v0, %v2187_v47 }
 0x309   :  { %v935_v6 = vmax.f32 %v821_v3, 0.0  ;;  %v824_v14 = vadd.f32 %v2187_v47, %v823_v1 }
 0x30a   :  { %v976_v10 = vmul.f32 %v2194_v60, %v937_v2  ;;  %v938_v13 = vmax.f32 %v832_v8, 0.0 }
 0x30b   :  { %v974_v15 = vmul.f32 %v2194_v60, %v935_v6  ;;  %v936_v17 = vmax.f32 %v824_v14, 0.0 }
 0x30c   :  { %1008 = vadd.xlane.f32.xlu0 %v973_v4  ;;  %v977_v20 = vmul.f32 %v2194_v60, %v938_v13 }
 0x30d   :  { %v1656_v5 = vpop.f32.mrb[24].mxu0  ;;  %v975_v24 = vmul.f32 %v2194_v60, %v936_v17 }
 0x30e   :  { %v836_v9 = vpop.f32.mrb[25].mxu0  ;;  %v845_v41 = vadd.f32 %v1656_v5, %v2187_v47 }
 0x30f   :  { %v1657_v11 = vpop.f32.mrb[26].mxu0  ;;  %v837_v18 = vadd.f32 %v2187_v47, %v836_v9 }
 0x310   :  { %v839_v12 = vpop.f32.mrb[27].mxu0  ;;  %1014 = vadd.xlane.f32.xlu0 %v976_v10  ;;  %v941_v50 = vmax.f32 %v845_v41, 0.0  ;;  %v848_v51 = vadd.f32 %v1657_v11, %v2187_v47 }
 0x311   :  { %v939_v23 = vmax.f32 %v837_v18, 0.0  ;;  %v840_v29 = vadd.f32 %v2187_v47, %v839_v12 }
 0x312   :  { %v942_v58 = vmax.f32 %v848_v51, 0.0  ;;  %v980_v59 = vmul.f32 %v2194_v60, %v941_v50 }
 0x313   :  { %v978_v28 = vmul.f32 %v2194_v60, %v939_v23  ;;  %v940_v42 = vmax.f32 %v840_v29, 0.0 }
 0x314   :  { %1010 = vadd.xlane.f32.xlu0 %v974_v15  ;;  %v981_v4 = vmul.f32 %v2194_v60, %v942_v58 }
 0x315   :  { %v2208_v16 = vpop.f32.mrb[28].mxu0  ;;  %v979_v53 = vmul.f32 %v2194_v60, %v940_v42 }
 0x316   :  { %v852_v19 = vpop.f32.mrb[29].mxu0  ;;  %v861_v8 = vadd.f32 %v2208_v16, %v2187_v47 }
 0x317   :  { %v2212_v21 = vpop.f32.mrb[30].mxu0  ;;  %v853_v7 = vadd.f32 %v2187_v47, %v852_v19 }
 0x318   :  { %v855_v22 = vpop.f32.mrb[31].mxu0  ;;  %1016 = vadd.xlane.f32.xlu0 %v977_v20  ;;  %v864_v29 = vadd.f32 %v2212_v21, %v2187_v47 }
 0x319   :  { %v943_v0 = vmax.f32 %v853_v7, 0.0  ;;  %v856_v1 = vadd.f32 %v2187_v47, %v855_v22 }
 0x31b   :  { %v944_v15 = vmax.f32 %v856_v1, 0.0  ;;  %v982_v18 = vmul.f32 %v2194_v60, %v943_v0 }
 0x31c   :  { %1012 = vadd.xlane.f32.xlu0 %v975_v24 }
 0x31d   :  { %v1664_v25 = vpop.f32.mrb[32].mxu0 }
 0x31e   :  { %v877_v26 = vadd.f32 %v1664_v25, %v2187_v47  ;;  %v868_v27 = vpop.f32.mrb[33].mxu0 }
 0x31f   :  { %v869_v30 = vadd.f32 %v2187_v47, %v868_v27  ;;  %v1665_v31 = vpop.f32.mrb[34].mxu0 }
 0x320   :  { %v949_v32 = vmax.f32 %v877_v26, 0.0  ;;  %v880_v33 = vadd.f32 %v1665_v31, %v2187_v47  ;;  %v871_v34 = vpop.f32.mrb[35].mxu0  ;;  %1018 = vadd.xlane.f32.xlu0 %v978_v28  ;;  %v945_v28 = vmax.f32 %v861_v8, 0.0 }
 0x321   :  { %v947_v36 = vmax.f32 %v869_v30, 0.0  ;;  %v872_v39 = vadd.f32 %v2187_v47, %v871_v34  ;;  %v983_v30 = vmul.f32 %v2194_v60, %v944_v15 }
 0x322   :  { %v950_v37 = vmax.f32 %v880_v33, 0.0  ;;  %v988_v40 = vmul.f32 %v2194_v60, %v949_v32 }
 0x323   :  { %v986_v43 = vmul.f32 %v2194_v60, %v947_v36  ;;  %v948_v45 = vmax.f32 %v872_v39, 0.0 }
 0x324   :  { %1038 = vadd.xlane.f32.xlu1 %v988_v40  ;;  %v989_v49 = vmul.f32 %v2194_v60, %v950_v37 }
 0x325   :  { %v1668_v44 = vpop.f32.mrb[36].mxu0  ;;  %1034 = vadd.xlane.f32.xlu0 %v986_v43  ;;  %v987_v57 = vmul.f32 %v2194_v60, %v948_v45  ;;  %v946_v43 = vmax.f32 %v864_v29, 0.0 }
 0x326   :  { %v893_v46 = vadd.f32 %v1668_v44, %v2187_v47  ;;  %v884_v48 = vpop.f32.mrb[37].mxu0  ;;  %v984_v44 = vmul.f32 %v2194_v60, %v945_v28 }
 0x327   :  { %v1669_v52 = vpop.f32.mrb[38].mxu0  ;;  %v885_v56 = vadd.f32 %v2187_v47, %v884_v48  ;;  %v985_v50 = vmul.f32 %v2194_v60, %v946_v43 }
 0x328   :  { %v887_v54 = vpop.f32.mrb[39].mxu0  ;;  %1040 = vadd.xlane.f32.xlu1 %v989_v49  ;;  %v953_v55 = vmax.f32 %v893_v46, 0.0  ;;  %v896_v61 = vadd.f32 %v1669_v52, %v2187_v47  ;;  %v2264_v52 = vld [vmem:[#allocation2] ss:$0 sm:$0xff] }
 0x329   :  { %1020 = vadd.xlane.f32.xlu0 %v979_v53  ;;  %v951_v35 = vmax.f32 %v885_v56, 0.0  ;;  %v888_v12 = vadd.f32 %v2187_v47, %v887_v54 }
 0x32a   :  { %v992_v63 = vmul.f32 %v2194_v60, %v953_v55  ;;  %v954_v11 = vmax.f32 %v896_v61, 0.0 }
 0x32b   :  { %v990_v14 = vmul.f32 %v2194_v60, %v951_v35  ;;  %v952_v23 = vmax.f32 %v888_v12, 0.0 }
 0x32c   :  { %1036 = vadd.xlane.f32.xlu1 %v987_v57  ;;  %v993_v25 = vmul.f32 %v2194_v60, %v954_v11 }
 0x32d   :  { %1022 = vadd.xlane.f32.xlu0 %v980_v59  ;;  %v1672_v38 = vpop.f32.mrb[40].mxu0  ;;  %v991_v41 = vmul.f32 %v2194_v60, %v952_v23 }
 0x32e   :  { %v900_v62 = vpop.f32.mrb[41].mxu0  ;;  %v909_v24 = vadd.f32 %v1672_v38, %v2187_v47 }
 0x32f   :  { %v901_v2 = vadd.f32 %v2187_v47, %v900_v62  ;;  %v1673_v3 = vpop.f32.mrb[42].mxu0 }
 0x330   :  { %v912_v5 = vadd.f32 %v1673_v3, %v2187_v47  ;;  %1046 = vadd.xlane.f32.xlu1 %v992_v63  ;;  %v903_v6 = vpop.f32.mrb[43].mxu0  ;;  %v957_v40 = vmax.f32 %v909_v24, 0.0 }
 0x331   :  { %v955_v9 = vmax.f32 %v901_v2, 0.0  ;;  %v904_v10 = vadd.f32 %v2187_v47, %v903_v6  ;;  %1024 = vadd.xlane.f32.xlu0 %v981_v4 }
 0x332   :  { %v958_v13 = vmax.f32 %v912_v5, 0.0 }
 0x333   :  { %v956_v17 = vmax.f32 %v904_v10, 0.0  ;;  %v994_v19 = vmul.f32 %v2194_v60, %v955_v9 }
 0x334   :  { %1042 = vadd.xlane.f32.xlu1 %v990_v14  ;;  %v997_v20 = vmul.f32 %v2194_v60, %v958_v13 }
 0x335   :  { %1026 = vadd.xlane.f32.xlu0 %v982_v18  ;;  %v1676_v16 = vpop.f32.mrb[44].mxu0  ;;  %v995_v22 = vmul.f32 %v2194_v60, %v956_v17 }
 0x336   :  { %v925_v26 = vadd.f32 %v1676_v16, %v2187_v47  ;;  %v916_v27 = vpop.f32.mrb[45].mxu0 }
 0x337   :  { %v917_v31 = vadd.f32 %v2187_v47, %v916_v27  ;;  %v1677_v32 = vpop.f32.mrb[46].mxu0 }
 0x338   :  { %1048 = vadd.xlane.f32.xlu1 %v993_v25  ;;  %v961_v33 = vmax.f32 %v925_v26, 0.0  ;;  %v928_v34 = vadd.f32 %v1677_v32, %v2187_v47  ;;  %v919_v36 = vpop.f32.mrb[47].mxu0 }
 0x339   :  { %1028 = vadd.xlane.f32.xlu0 %v983_v30  ;;  %v959_v37 = vmax.f32 %v917_v31, 0.0  ;;  %v920_v39 = vadd.f32 %v2187_v47, %v919_v36  ;;  %v996_v47 = vmul.f32 %v2194_v60, %v957_v40 }
 0x33a   :  { %v962_v42 = vmax.f32 %v928_v34, 0.0  ;;  %v1000_v21 = vmul.f32 %v2194_v60, %v961_v33 }
 0x33b   :  { %v960_v45 = vmax.f32 %v920_v39, 0.0  ;;  %v998_v46 = vmul.f32 %v2194_v60, %v959_v37 }
 0x33c   :  { %1044 = vadd.xlane.f32.xlu1 %v991_v41  ;;  %v1001_v48 = vmul.f32 %v2194_v60, %v962_v42 }
 0x33d   :  { %1030 = vadd.xlane.f32.xlu0 %v984_v44  ;;  %v999_v49 = vmul.f32 %v2194_v60, %v960_v45 }
 0x340   :  { %1054 = vadd.xlane.f32.xlu1 %v996_v47 }
 0x341   :  { %1032 = vadd.xlane.f32.xlu0 %v985_v50 }
 0x344   :  { %1050 = vadd.xlane.f32.xlu1 %v994_v19 }
 0x348   :  { %1056 = vadd.xlane.f32.xlu1 %v997_v20 }
 0x34c   :  { %1052 = vadd.xlane.f32.xlu1 %v995_v22 }
 0x350   :  { %1062 = vadd.xlane.f32.xlu1 %v1000_v21 }
 0x354   :  { %1058 = vadd.xlane.f32.xlu1 %v998_v46 }
 0x358   :  { %1064 = vadd.xlane.f32.xlu1 %v1001_v48 }
 0x35c   :  { %1060 = vadd.xlane.f32.xlu1 %v999_v49 }
 0x391   :  { %v1007_v51 = vpop.xlane.xlu0 %1006 }
 0x392   :  { %v1075_v56 = vadd.f32 %v2264_v52, %v1007_v51 }
 0x394   :  { %v1005_v53 = vpop.xlane.xlu1 %1004  ;;  %v1432_v59 = vmul.f32 -1.442695, %v1075_v56 }
 0x395   :  { %v1074_v54 = vadd.f32 %v2264_v52, %v1005_v53  ;;  %v1003_v55 = vpop.xlane.xlu0 %1002 }
 0x396   :  { %v1073_v60 = vadd.f32 %v2264_v52, %v1003_v55 }
 0x397   :  { %v1431_v57 = vmul.f32 -1.442695, %v1074_v54 }
 0x398   :  { %v1430_v58 = vmul.f32 -1.442695, %v1073_v60 }
 0x399   :  { %1728 = vpow2.f32 %v1431_v57  ;;  %v1009_v7 = vpop.xlane.xlu0 %1008 }
 0x39a   :  { %1730 = vpow2.f32 %v1430_v58  ;;  %v1076_v38 = vadd.f32 %v2264_v52, %v1009_v7 }
 0x39b   :  { %1732 = vpow2.f32 %v1432_v59 }
 0x39c   :  { %v1433_v61 = vmul.f32 -1.442695, %v1076_v38 }
 0x39d   :  { %v1015_v35 = vpop.xlane.xlu0 %1014 }
 0x39e   :  { %1734 = vpow2.f32 %v1433_v61  ;;  %v1079_v4 = vadd.f32 %v2264_v52, %v1015_v35 }
 0x3a0   :  { %v1436_v9 = vmul.f32 -1.442695, %v1079_v4 }
 0x3a1   :  { %v1011_v62 = vpop.xlane.xlu0 %1010 }
 0x3a2   :  { %v1077_v63 = vadd.f32 %v2264_v52, %v1011_v62 }
 0x3a3   :  { %v1729_v0 = vpop.eup %1728 }
 0x3a4   :  { %v1731_v1 = vpop.eup %1730  ;;  %v1434_v2 = vmul.f32 -1.442695, %v1077_v63  ;;  %v1202_v6 = vadd.f32 1.0, %v1729_v0 }
 0x3a5   :  { %v1201_v3 = vadd.f32 1.0, %v1731_v1  ;;  %v1017_v5 = vpop.xlane.xlu0 %1016  ;;  %v1733_v8 = vpop.eup %1732 }
 0x3a6   :  { %v1080_v10 = vadd.f32 %v2264_v52, %v1017_v5  ;;  %v1203_v13 = vadd.f32 1.0, %v1733_v8 }
 0x3a7   :  { %1736 = vrcp.f32 %v1201_v3 }
 0x3a8   :  { %1738 = vpow2.f32 %v1434_v2  ;;  %v1735_v14 = vpop.eup %1734  ;;  %v1437_v17 = vmul.f32 -1.442695, %v1080_v10 }
 0x3a9   :  { %v1013_v11 = vpop.xlane.xlu0 %1012  ;;  %1740 = vrcp.f32 %v1202_v6  ;;  %v1204_v20 = vadd.f32 1.0, %v1735_v14 }
 0x3aa   :  { %v1078_v12 = vadd.f32 %v2264_v52, %v1013_v11  ;;  %1742 = vpow2.f32 %v1436_v9 }
 0x3ac   :  { %v1435_v15 = vmul.f32 -1.442695, %v1078_v12 }
 0x3ad   :  { %v1019_v18 = vpop.xlane.xlu0 %1018 }
 0x3ae   :  { %1744 = vpow2.f32 %v1435_v15  ;;  %v1081_v19 = vadd.f32 %v2264_v52, %v1019_v18 }
 0x3af   :  { %1746 = vrcp.f32 %v1203_v13 }
 0x3b0   :  { %v1438_v16 = vmul.f32 -1.442695, %v1081_v19  ;;  %1748 = vpow2.f32 %v1437_v17 }
 0x3b1   :  { %v1737_v22 = vpop.eup %1736  ;;  %v1039_v23 = vpop.xlane.xlu1 %1038 }
 0x3b2   :  { %v1739_v24 = vpop.eup %1738  ;;  %1750 = vpow2.f32 %v1438_v16  ;;  %v1091_v25 = vadd.f32 %v2264_v52, %v1039_v23  ;;  %1297 = vxpose.xlu0.b32.start [1/16] (narrow) %v1737_v22, 8  ;;  %v1035_v26 = vpop.xlane.xlu0 %1034 }
 0x3b3   :  { %1752 = vrcp.f32 %v1204_v20  ;;  %v1205_v27 = vadd.f32 1.0, %v1739_v24  ;;  %v1089_v28 = vadd.f32 %v2264_v52, %v1035_v26  ;;  %v1741_v30 = vpop.eup %1740 }
 0x3b4   :  { %v1448_v29 = vmul.f32 -1.442695, %v1091_v25  ;;  %v1743_v34 = vpop.eup %1742 }
 0x3b5   :  { %v1446_v31 = vmul.f32 -1.442695, %v1089_v28  ;;  %v1041_v32 = vpop.xlane.xlu1 %1040  ;;  %1754 = vrcp.f32 %v1205_v27  ;;  %v1207_v46 = vadd.f32 1.0, %v1743_v34 }
 0x3b6   :  { %1298 = vxpose.xlu0.b32.cont [2/16] (narrow) %v1741_v30, 8  ;;  %v1021_v33 = vpop.xlane.xlu0 %1020  ;;  %1756 = vpow2.f32 %v1448_v29  ;;  %v1092_v41 = vadd.f32 %v2264_v52, %v1041_v32 }
 0x3b7   :  { %v1082_v36 = vadd.f32 %v2264_v52, %v1021_v33  ;;  %1758 = vpow2.f32 %v1446_v31 }
 0x3b8   :  { %v1745_v37 = vpop.eup %1744  ;;  %v1449_v51 = vmul.f32 -1.442695, %v1092_v41 }
 0x3b9   :  { %v1747_v39 = vpop.eup %1746  ;;  %v1206_v40 = vadd.f32 1.0, %v1745_v37  ;;  %v1439_v42 = vmul.f32 -1.442695, %v1082_v36  ;;  %v1037_v21 = vpop.xlane.xlu1 %1036 }
 0x3ba   :  { %v1090_v43 = vadd.f32 %v2264_v52, %v1037_v21  ;;  %1299 = vxpose.xlu0.b32.cont [3/16] (narrow) %v1747_v39, 8  ;;  %v1023_v44 = vpop.xlane.xlu0 %1022  ;;  %v1749_v45 = vpop.eup %1748 }
 0x3bb   :  { %1760 = vrcp.f32 %v1206_v40  ;;  %v1083_v48 = vadd.f32 %v2264_v52, %v1023_v44  ;;  %v1208_v55 = vadd.f32 1.0, %v1749_v45 }
 0x3bc   :  { %v1751_v49 = vpop.eup %1750  ;;  %1762 = vpow2.f32 %v1439_v42  ;;  %v1447_v47 = vmul.f32 -1.442695, %v1090_v43 }
 0x3bd   :  { %v1753_v50 = vpop.eup %1752  ;;  %v1440_v53 = vmul.f32 -1.442695, %v1083_v48  ;;  %v1047_v54 = vpop.xlane.xlu1 %1046  ;;  %v1209_v60 = vadd.f32 1.0, %v1751_v49 }
 0x3be   :  { %1764 = vpow2.f32 %v1447_v47  ;;  %1300 = vxpose.xlu0.b32.cont [4/16] (narrow) %v1753_v50, 8  ;;  %v1025_v56 = vpop.xlane.xlu0 %1024  ;;  %v1095_v57 = vadd.f32 %v2264_v52, %v1047_v54 }
 0x3bf   :  { %1766 = vrcp.f32 %v1207_v46  ;;  %v1084_v58 = vadd.f32 %v2264_v52, %v1025_v56  ;;  %v1755_v7 = vpop.eup %1754 }
 0x3c0   :  { %1768 = vpow2.f32 %v1440_v53  ;;  %v1757_v59 = vpop.eup %1756  ;;  %v1452_v1 = vmul.f32 -1.442695, %v1095_v57 }
 0x3c1   :  { %1770 = vpow2.f32 %v1449_v51  ;;  %v1441_v38 = vmul.f32 -1.442695, %v1084_v58  ;;  %v1043_v35 = vpop.xlane.xlu1 %1042  ;;  %v1759_v61 = vpop.eup %1758  ;;  %v1219_v5 = vadd.f32 1.0, %v1757_v59 }
 0x3c2   :  { %1772 = vrcp.f32 %v1208_v55  ;;  %v1093_v62 = vadd.f32 %v2264_v52, %v1043_v35  ;;  %1301 = vxpose.xlu0.b32.cont [5/16] (narrow) %v1755_v7, 8  ;;  %v1027_v63 = vpop.xlane.xlu0 %1026  ;;  %v1217_v0 = vadd.f32 1.0, %v1759_v61 }
 0x3c3   :  { %1774 = vrcp.f32 %v1209_v60  ;;  %v1085_v2 = vadd.f32 %v2264_v52, %v1027_v63 }
 0x3c4   :  { %1776 = vpow2.f32 %v1441_v38  ;;  %v1450_v3 = vmul.f32 -1.442695, %v1093_v62 }
 0x3c5   :  { %v1761_v4 = vpop.eup %1760  ;;  %1778 = vrcp.f32 %v1217_v0  ;;  %v1442_v6 = vmul.f32 -1.442695, %v1085_v2  ;;  %v1049_v8 = vpop.xlane.xlu1 %1048 }
 0x3c6   :  { %v1763_v9 = vpop.eup %1762  ;;  %1780 = vpow2.f32 %v1450_v3  ;;  %v1096_v10 = vadd.f32 %v2264_v52, %v1049_v8  ;;  %1302 = vxpose.xlu0.b32.cont [6/16] (narrow) %v1761_v4, 8  ;;  %v1029_v11 = vpop.xlane.xlu0 %1028 }
 0x3c7   :  { %v1210_v12 = vadd.f32 1.0, %v1763_v9  ;;  %1782 = vpow2.f32 %v1452_v1  ;;  %v1086_v13 = vadd.f32 %v2264_v52, %v1029_v11 }
 0x3c8   :  { %v1765_v14 = vpop.eup %1764  ;;  %1784 = vpow2.f32 %v1442_v6  ;;  %v1453_v18 = vmul.f32 -1.442695, %v1096_v10 }
 0x3c9   :  { %v1767_v15 = vpop.eup %1766  ;;  %1786 = vrcp.f32 %v1219_v5  ;;  %v1218_v17 = vadd.f32 1.0, %v1765_v14  ;;  %v1443_v19 = vmul.f32 -1.442695, %v1086_v13  ;;  %v1045_v20 = vpop.xlane.xlu1 %1044 }
 0x3ca   :  { %v1769_v16 = vpop.eup %1768  ;;  %1788 = vrcp.f32 %v1210_v12  ;;  %v1094_v22 = vadd.f32 %v2264_v52, %v1045_v20  ;;  %1303 = vxpose.xlu0.b32.cont [7/16] (narrow) %v1767_v15, 8  ;;  %v1031_v23 = vpop.xlane.xlu0 %1030 }
 0x3cb   :  { %v1771_v24 = vpop.eup %1770  ;;  %1790 = vrcp.f32 %v1218_v17  ;;  %v1211_v25 = vadd.f32 1.0, %v1769_v16  ;;  %v1087_v26 = vadd.f32 %v2264_v52, %v1031_v23 }
 0x3cc   :  { %v1773_v27 = vpop.eup %1772  ;;  %1792 = vpow2.f32 %v1443_v19  ;;  %v1451_v28 = vmul.f32 -1.442695, %v1094_v22  ;;  %v1220_v33 = vadd.f32 1.0, %v1771_v24 }
 0x3cd   :  { %v1775_v29 = vpop.eup %1774  ;;  %1794 = vpow2.f32 %v1453_v18  ;;  %v1444_v30 = vmul.f32 -1.442695, %v1087_v26  ;;  %v1055_v31 = vpop.xlane.xlu1 %1054 }
 0x3ce   :  { %v1777_v32 = vpop.eup %1776  ;;  %1796 = vpow2.f32 %v1451_v28  ;;  %1304 = vxpose.xlu0.b32.cont [8/16] (narrow) %v1773_v27, 8  ;;  %v1033_v34 = vpop.xlane.xlu0 %1032  ;;  %v1099_v51 = vadd.f32 %v2264_v52, %v1055_v31 }
 0x3cf   :  { %v1779_v36 = vpop.eup %1778  ;;  %1798 = vrcp.f32 %v1211_v25  ;;  %v1212_v37 = vadd.f32 1.0, %v1777_v32  ;;  %v1088_v39 = vadd.f32 %v2264_v52, %v1033_v34 }
 0x3d0   :  { %v1781_v40 = vpop.eup %1780  ;;  %1800 = vpow2.f32 %v1444_v30  ;;  %1329 = vxpose.xlu1.b32.start [1/16] (narrow) %v1779_v36, 8  ;;  %v1456_v59 = vmul.f32 -1.442695, %v1099_v51 }
 0x3d1   :  { %v1783_v41 = vpop.eup %1782  ;;  %v1221_v42 = vadd.f32 1.0, %v1781_v40  ;;  %v1445_v21 = vmul.f32 -1.442695, %v1088_v39  ;;  %v1051_v43 = vpop.xlane.xlu1 %1050  ;;  %1802 = vrcp.f32 %v1220_v33 }
 0x3d2   :  { %v1785_v44 = vpop.eup %1784  ;;  %v1097_v45 = vadd.f32 %v2264_v52, %v1051_v43  ;;  %1305 = vxpose.xlu0.b32.cont [9/16] (narrow) %v1775_v29, 8  ;;  %1804 = vrcp.f32 %v1212_v37  ;;  %v1223_v57 = vadd.f32 1.0, %v1783_v41 }
 0x3d3   :  { %v1787_v46 = vpop.eup %1786  ;;  %v1213_v48 = vadd.f32 1.0, %v1785_v44  ;;  %1806 = vpow2.f32 %v1445_v21 }
 0x3d4   :  { %v1789_v49 = vpop.eup %1788  ;;  %v1454_v47 = vmul.f32 -1.442695, %v1097_v45  ;;  %1808 = vrcp.f32 %v1221_v42 }
 0x3d5   :  { %v1791_v50 = vpop.eup %1790  ;;  %v1057_v53 = vpop.xlane.xlu1 %1056 }
 0x3d6   :  { %v1793_v54 = vpop.eup %1792  ;;  %1810 = vpow2.f32 %v1454_v47  ;;  %1330 = vxpose.xlu1.b32.cont [2/16] (narrow) %v1791_v50, 8  ;;  %1306 = vxpose.xlu0.b32.cont [10/16] (narrow) %v1789_v49, 8  ;;  %v1100_v61 = vadd.f32 %v2264_v52, %v1057_v53 }
 0x3d7   :  { %v1795_v55 = vpop.eup %1794  ;;  %1812 = vrcp.f32 %v1213_v48  ;;  %v1214_v56 = vadd.f32 1.0, %v1793_v54  ;;  %v1982_v54 = vmov 1966171168  }
 0x3d8   :  { %v1797_v60 = vpop.eup %1796  ;;  %v1224_v3 = vadd.f32 1.0, %v1795_v55  ;;  %v1457_v6 = vmul.f32 -1.442695, %v1100_v61  ;;  %v1365_v55 = vunpack.c.l.s4 %v1982_v54 }
 0x3d9   :  { %v1799_v58 = vpop.eup %1798  ;;  %v1222_v7 = vadd.f32 1.0, %v1797_v60  ;;  %v1053_v38 = vpop.xlane.xlu1 %1052  ;;  %1814 = vrcp.f32 %v1214_v56  ;;  %v1367_v56 = vlaneseq }
 0x3da   :  { %v1801_v35 = vpop.eup %1800  ;;  %v1098_v62 = vadd.f32 %v2264_v52, %v1053_v38  ;;  %1331 = vxpose.xlu1.b32.cont [3/16] (narrow) %v1787_v46, 8  ;;  %1307 = vxpose.xlu0.b32.cont [11/16] (narrow) %v1799_v58, 8  ;;  %v1366_v60 = vunpack.c.0.s8 %v1365_v55 }
 0x3db   :  { %1816 = vrcp.f32 %v1222_v7  ;;  %v1215_v63 = vadd.f32 1.0, %v1801_v35  ;;  %v1803_v0 = vpop.eup %1802  ;;  %vm1381_vm0 = vcmp.lt.s32.totalorder %v1367_v56, 256 }
 0x3dc   :  { %1818 = vrcp.f32 %v1223_v57  ;;  %v1455_v1 = vmul.f32 -1.442695, %v1098_v62  ;;  %v1805_v2 = vpop.eup %1804  ;;  %v1368_v57 = vshrl.u32 %v1367_v56, 7 }
 0x3dd   :  { %1820 = vpow2.f32 %v1456_v59  ;;  %v1063_v4 = vpop.xlane.xlu1 %1062  ;;  %v1807_v5 = vpop.eup %1806 }
 0x3de   :  { %1822 = vpow2.f32 %v1455_v1  ;;  %1332 = vxpose.xlu1.b32.cont [4/16] (narrow) %v1803_v0, 8  ;;  %1308 = vxpose.xlu0.b32.cont [12/16] (narrow) %v1805_v2, 8  ;;  %v1809_v8 = vpop.eup %1808  ;;  %v1216_v9 = vadd.f32 1.0, %v1807_v5  ;;  %v1103_v19 = vadd.f32 %v2264_v52, %v1063_v4  ;;  %v1369_v7 = vsub.s32 %v1366_v60, %v1368_v57 }
 0x3df   :  { %1824 = vrcp.f32 %v1215_v63 }
 0x3e0   :  { %v1811_v10 = vpop.eup %1810  ;;  %1826 = vrcp.f32 %v1224_v3  ;;  %v1460_v26 = vmul.f32 -1.442695, %v1103_v19 }
 0x3e1   :  { %v1813_v11 = vpop.eup %1812  ;;  %v1059_v12 = vpop.xlane.xlu1 %1058  ;;  %1828 = vpow2.f32 %v1457_v6  ;;  %v1225_v14 = vadd.f32 1.0, %v1811_v10 }
 0x3e2   :  { %v1101_v13 = vadd.f32 %v2264_v52, %v1059_v12  ;;  %1333 = vxpose.xlu1.b32.cont [5/16] (narrow) %v1809_v8, 8  ;;  %1309 = vxpose.xlu0.b32.cont [13/16] (narrow) %v1813_v11, 8  ;;  %1830 = vrcp.f32 %v1216_v9 }
 0x3e3   :  { %v1815_v15 = vpop.eup %1814 }
 0x3e4   :  { %v1458_v17 = vmul.f32 -1.442695, %v1101_v13 }
 0x3e5   :  { %v1817_v18 = vpop.eup %1816  ;;  %v1065_v20 = vpop.xlane.xlu1 %1064 }
 0x3e6   :  { %v1819_v16 = vpop.eup %1818  ;;  %1832 = vpow2.f32 %v1458_v17  ;;  %1334 = vxpose.xlu1.b32.cont [6/16] (narrow) %v1817_v18, 8  ;;  %1310 = vxpose.xlu0.b32.cont [14/16] (narrow) %v1815_v15, 8  ;;  %v1104_v28 = vadd.f32 %v2264_v52, %v1065_v20 }
 0x3e7   :  { %v1821_v22 = vpop.eup %1820  ;;  %1834 = vrcp.f32 %v1225_v14 }
 0x3e8   :  { %v1823_v23 = vpop.eup %1822  ;;  %v1227_v31 = vadd.f32 1.0, %v1821_v22  ;;  %v1461_v36 = vmul.f32 -1.442695, %v1104_v28 }
 0x3e9   :  { %v1825_v24 = vpop.eup %1824  ;;  %v1226_v25 = vadd.f32 1.0, %v1823_v23  ;;  %v1061_v27 = vpop.xlane.xlu1 %1060 }
 0x3ea   :  { %v1102_v29 = vadd.f32 %v2264_v52, %v1061_v27  ;;  %1335 = vxpose.xlu1.b32.cont [7/16] (narrow) %v1819_v16, 8  ;;  %1311 = vxpose.xlu0.b32.cont [15/16] (narrow) %v1825_v24, 8  ;;  %v1827_v30 = vpop.eup %1826 }
 0x3eb   :  { %1836 = vrcp.f32 %v1226_v25  ;;  %v1829_v32 = vpop.eup %1828 }
 0x3ec   :  { %v1459_v33 = vmul.f32 -1.442695, %v1102_v29  ;;  %v1831_v34 = vpop.eup %1830  ;;  %1838 = vpow2.f32 %v1460_v26  ;;  %v1228_v37 = vadd.f32 1.0, %v1829_v32 }
 0x3ee   :  { %1840 = vpow2.f32 %v1459_v33  ;;  %1336 = vxpose.xlu1.b32.cont [8/16] (narrow) %v1827_v30, 8  ;;  %1312 = vxpose.xlu0.b32.end [16/16] (narrow) %v1831_v34, 8 }
 0x3ef   :  { %1842 = vrcp.f32 %v1227_v31 }
 0x3f0   :  { %v1833_v39 = vpop.eup %1832  ;;  %1844 = vpow2.f32 %v1461_v36 }
 0x3f1   :  { %v1835_v40 = vpop.eup %1834  ;;  %1846 = vrcp.f32 %v1228_v37  ;;  %v1229_v52 = vadd.f32 1.0, %v1833_v39 }
 0x3f2   :  { %1337 = vxpose.xlu1.b32.cont [9/16] (narrow) %v1835_v40, 8 }
 0x3f3   :  { %1848 = vrcp.f32 %v1229_v52 }
 0x3f5   :  { %v1837_v41 = vpop.eup %1836 }
 0x3f6   :  { %1338 = vxpose.xlu1.b32.cont [10/16] (narrow) %v1837_v41, 8  ;;  %v1839_v42 = vpop.eup %1838 }
 0x3f7   :  { %v1231_v45 = vadd.f32 1.0, %v1839_v42 }
 0x3f8   :  { %v1841_v21 = vpop.eup %1840 }
 0x3f9   :  { %v1843_v43 = vpop.eup %1842  ;;  %v1230_v44 = vadd.f32 1.0, %v1841_v21 }
 0x3fa   :  { %1339 = vxpose.xlu1.b32.cont [11/16] (narrow) %v1843_v43, 8  ;;  %v1845_v46 = vpop.eup %1844 }
 0x3fb   :  { %1850 = vrcp.f32 %v1230_v44  ;;  %v1847_v48 = vpop.eup %1846  ;;  %v1232_v49 = vadd.f32 1.0, %v1845_v46 }
 0x3fc   :  { %1852 = vrcp.f32 %v1231_v45 }
 0x3fd   :  { %v1849_v47 = vpop.eup %1848  ;;  %1854 = vrcp.f32 %v1232_v49 }
 0x3fe   :  { %1340 = vxpose.xlu1.b32.cont [12/16] (narrow) %v1847_v48, 8 }
 0x402   :  { %1341 = vxpose.xlu1.b32.cont [13/16] (narrow) %v1849_v47, 8 }
 0x405   :  { %v1851_v50 = vpop.eup %1850 }
 0x406   :  { %1342 = vxpose.xlu1.b32.cont [14/16] (narrow) %v1851_v50, 8  ;;  %v1853_v51 = vpop.eup %1852 }
 0x407   :  { %v1855_v53 = vpop.eup %1854 }
 0x40a   :  { %1343 = vxpose.xlu1.b32.cont [15/16] (narrow) %v1853_v51, 8 }
 0x40e   :  { %1344 = vxpose.xlu1.b32.end [16/16] (narrow) %v1855_v53, 8 }
 0x432   :  { %v1313_v58 = vpop.trf.xlu0 }
 0x452   :  { %v1345_v59 = vpop.trf.xlu1 }
 0x453   :  { %v1363_v38 = vcombine.low %v1313_v58, %v1345_v59 }
 0x455   :  { %v1370_v35 = vrot.slane %v1363_v38, %v1369_v7 }
 0x457   :  { %v1377_v61 = vrot.slane %v1370_v35, %v1369_v7 }
 0x459   :  { %1383 = vst.msk [vmem:[#allocation11] sm:$0x3] %vm1381_vm0, %v1377_v61 }
 0x45a   :  { %1955 = shalt.err (!%p1952_p8)
}
 0x45b   :  { %s1956_s24 = scalar_lea.hbm %s2319_s9, 32 }
 0x45c   :  { %p1957_p9 = scmp.ne.s32.totalorder %s2319_s9, %s1956_s24  ;;  %p1960_p10 = scmp.lt.u32.totalorder %s1956_s24, %s2319_s9 }
 0x45e   :  { %p1962_p11 = pnand %p1960_p10, %p1957_p9 }
 0x460   :  { %1965 = shalt.err (!%p1962_p11)
}
 0x461   :  { %1393 = dma.vmem_to_hbm [thread:$0]  %s1391_s7, 32, %s2319_s9, [#allocation5]  }
 0x462   :  { %1972 = dma.done.wait [#allocation5], 32  }
 0x463   :  { %1973 = vsyncadd [#allocation5], 4294967264 }
 0x464   :  { %1397 = vsyncpa [#allocation4], 1 }
 0x465   :  { %1398 = vsyncpa [#allocation7], 1 }
 0x466   :  { %1399 = vsyncpa [#allocation10], 1 }
 0x467   :  { %1400 = vsyncpa [#allocation5], 1 }

</bundles_post_ra>
